<compile_context>
chip_gen: v6e
topology: v6e:2x2x1
jax: 0.10.0
libtpu: 0.0.40
codegen_flags: <defaults>
</compile_context>

<pallas_src>
import functools

import jax
import jax.numpy as jnp
import numpy as np
from jax import lax
from jax.experimental import pallas as pl
from jax.experimental.pallas import tpu as pltpu

_HI = lax.Precision.HIGHEST


def _silu(x):
    return x * jax.nn.sigmoid(x)


def _choose_tiles(n, tile_i=64, tile_j=128):
    """Single block for graphs that fit one j-tile, else (tile_i, tile_j) blocks.

    tile_j must stay a multiple of 128 (it is the last dim of the adjacency /
    pos^T blocks); tile_i=64 keeps the bf16 live set small on v7x (64 MiB VMEM)
    and gives >=2 i-blocks for megacore whenever N > 128."""
    if n <= tile_j:
        t = max(8, ((n + 7) // 8) * 8)
        return t, t, t
    n_pad = ((n + tile_j - 1) // tile_j) * tile_j
    return tile_i, tile_j, n_pad


# --------------------------------------------------------------------------- #
# Main encoder + readout kernel: grid = (i node blocks, j neighbour blocks)
# --------------------------------------------------------------------------- #
def _equiv_encoder_kernel(nnz_ref,
                          ai_ref, aj_ref, hi_ref, pi_ref, pj_ref, pT_ref,
                          adj_ref,
                          wed_ref, we2_ref, be2_ref, wx_ref,
                          whh_ref, wha_ref, bh1_ref, wh2_ref, bh2_ref,
                          wout_ref, bout_ref, psel_ref,
                          out_ref,
                          agg_scr, pd_scr):
    f32 = jnp.float32
    i = pl.program_id(0)
    j = pl.program_id(1)
    nj = pl.num_programs(1)

    # ---- accumulator init (once per i block) ----
    @pl.when(j == 0)
    def _init():
        agg_scr[...] = jnp.zeros_like(agg_scr)
        pd_scr[...] = jnp.zeros_like(pd_scr)

    # ---- edge work, skipped entirely for empty adjacency blocks ----
    @pl.when(nnz_ref[i, j] > 0)
    def _edges():
        edt = ai_ref.dtype                       # bf16 on v6e/v7x, f32 on v5e
        ti, hdim = ai_ref.shape
        tj = aj_ref.shape[0]

        pos_i = pi_ref[...]                      # (Ti, 3) f32
        posT = pT_ref[...]                       # (3, Tj) f32

        # lane-dense (Ti, Tj) geometry planes (full-lane VPU / EUP work)
        rel_x = pos_i[:, 0:1] - posT[0:1, :]
        rel_y = pos_i[:, 1:2] - posT[1:2, :]
        rel_z = pos_i[:, 2:3] - posT[2:3, :]
        d2 = rel_x * rel_x + rel_y * rel_y + rel_z * rel_z      # (Ti, Tj) f32
        inv = pl.reciprocal(jnp.sqrt(d2) + 1.0, approx=True)    # (Ti, Tj) f32

        # edge MLP in edge dtype (a_i / a_j precomputed in the wrapper)
        pre = (ai_ref[...][:, None, :] + aj_ref[...][None, :, :]
               + d2.astype(edt)[:, :, None] * wed_ref[...][None, :, :])
        m1 = _silu(pre)                                          # (Ti,Tj,H) edt

        x2 = (jnp.dot(m1.reshape(ti * tj, hdim), we2_ref[...],
                      preferred_element_type=f32) + be2_ref[...])
        m2 = _silu(x2.astype(edt)).reshape(ti, tj, hdim)
        m2 = m2 * adj_ref[...][:, :, None]                       # mask non-edges

        # invariant aggregation (f32 accumulation)
        agg_scr[...] += jnp.sum(m2.astype(f32), axis=1)          # (Ti, H)

        # equivariant update: pd += pos_i * sum_j(w) - sum_j(w * pos_j)
        coef = jnp.dot(m2.reshape(ti * tj, hdim), wx_ref[...],
                       preferred_element_type=f32).reshape(ti, tj, 1)
        w3 = coef * inv[:, :, None]                              # (Ti,Tj,1) f32
        wsum = jnp.sum(w3, axis=1)                               # (Ti, 1)
        cross = jnp.sum(w3 * pj_ref[...][None, :, :], axis=1)    # (Ti, 3)
        pd_scr[...] += pos_i * wsum - cross

    # ---- node MLP + readout once per i block; lane-dense 128-wide store ----
    @pl.when(j == nj - 1)
    def _finalize():
        hi = hi_ref[...]
        u = _silu(jnp.dot(hi, whh_ref[...], precision=_HI,
                          preferred_element_type=f32)
                  + jnp.dot(agg_scr[...], wha_ref[...], precision=_HI,
                            preferred_element_type=f32)
                  + bh1_ref[...])
        h_enc = (hi + jnp.dot(u, wh2_ref[...], precision=_HI,
                              preferred_element_type=f32) + bh2_ref[...])
        eps_h = (jnp.dot(h_enc, wout_ref[...], precision=_HI,
                         preferred_element_type=f32) + bout_ref[...])
        pos_slab = jnp.dot(pd_scr[...], psel_ref[...], precision=_HI,
                           preferred_element_type=f32)
        out_ref[...] = (eps_h + pos_slab).astype(out_ref.dtype)


# --------------------------------------------------------------------------- #
# Readout epilogue: remove the per-graph mean of the equivariant output.
# --------------------------------------------------------------------------- #
def _readout_mean_kernel(seg_ref, segT_ref, cnt_ref, pd_ref, out_ref):
    f32 = jnp.float32
    pd = pd_ref[...]
    mean = jnp.dot(seg_ref[...], pd, precision=_HI,
                   preferred_element_type=f32) / cnt_ref[...]
    out_ref[...] = pd - jnp.dot(segT_ref[...], mean, precision=_HI,
                                preferred_element_type=f32)


# --------------------------------------------------------------------------- #
# Parameters
# --------------------------------------------------------------------------- #
def init_params(key, feat_dim, hidden_dim):
    ks = jax.random.split(key, 10)

    def w(k, shape, fan_in):
        return (jax.random.normal(k, shape, jnp.float32)
                / np.sqrt(fan_in)).astype(jnp.float32)

    return dict(
        W_ehi=w(ks[0], (feat_dim, hidden_dim), feat_dim),
        W_ehj=w(ks[1], (feat_dim, hidden_dim), feat_dim),
        W_ed=w(ks[2], (1, hidden_dim), 1),
        W_et=w(ks[3], (1, hidden_dim), 1),
        b_e1=jnp.zeros((1, hidden_dim), jnp.float32),
        W_e2=w(ks[4], (hidden_dim, hidden_dim), hidden_dim),
        b_e2=jnp.zeros((1, hidden_dim), jnp.float32),
        W_x=w(ks[5], (hidden_dim, 1), hidden_dim),
        W_hh=w(ks[6], (feat_dim, hidden_dim), feat_dim),
        W_ha=w(ks[7], (hidden_dim, hidden_dim), hidden_dim),
        b_h1=jnp.zeros((1, hidden_dim), jnp.float32),
        W_h2=w(ks[8], (hidden_dim, feat_dim), hidden_dim),
        b_h2=jnp.zeros((1, feat_dim), jnp.float32),
        W_out=w(ks[9], (feat_dim, feat_dim), feat_dim),
        b_out=jnp.zeros((1, feat_dim), jnp.float32),
    )


# --------------------------------------------------------------------------- #
# Wrapper
# --------------------------------------------------------------------------- #
def equivariant_parameterization(params, t, h, pos, edge_index, index,
                                 num_graphs, context=None,
                                 tile_i=64, tile_j=128,
                                 edge_dtype=jnp.bfloat16):
    # TODO(synk): `context` conditioning path not implemented (forward is
    # exercised with context=None, matching the Optional default).
    # NOTE: on v5e pass edge_dtype=jnp.float32 (no bf16 VPU/EUP path there).
    f32 = jnp.float32
    N, F = h.shape
    H = params["W_e2"].shape[0]
    blk_i, blk_j, n_pad = _choose_tiles(N, tile_i, tile_j)
    ni, nj = n_pad // blk_i, n_pad // blk_j
    out_w = ((F + 3 + 127) // 128) * 128

    # ---- dense padded graph tensors (padding nodes have no edges) ----
    h_p = jnp.zeros((n_pad, F), f32).at[:N].set(h.astype(f32))
    pos_p = jnp.zeros((n_pad, 3), f32).at[:N].set(pos.astype(f32))
    t_node = jnp.zeros((n_pad, 1), f32).at[:N, 0].set(
        jnp.reshape(t, (-1,))[index].astype(f32))
    adj = jnp.zeros((n_pad, n_pad), f32).at[
        edge_index[0], edge_index[1]].set(1.0)
    seg = jnp.zeros((num_graphs, n_pad), f32).at[:, :N].set(
        (index[None, :] == jnp.arange(num_graphs)[:, None]).astype(f32))
    cnt = jnp.maximum(jnp.sum(seg, axis=1, keepdims=True), 1.0)

    # ---- hoisted per-node edge-MLP projections (plain XLA matmuls) ----
    a_i = (jnp.dot(h_p, params["W_ehi"], precision=_HI)
           + t_node * params["W_et"] + params["b_e1"]).astype(edge_dtype)
    a_j = jnp.dot(h_p, params["W_ehj"], precision=_HI).astype(edge_dtype)
    pos_T = pos_p.T                                             # (3, n_pad)
    adj_e = adj.astype(edge_dtype)

    # per-block edge occupancy (scalar-prefetched) for block-sparsity skipping
    blk_nnz = (adj.reshape(ni, blk_i, nj, blk_j).sum(axis=(1, 3)) > 0
               ).astype(jnp.int32)

    # ---- lane-dense readout weights: eps_h -> cols [0,F), pos -> [F,F+3) ----
    w_out_p = jnp.zeros((F, out_w), f32).at[:, :F].set(params["W_out"])
    b_out_p = jnp.zeros((1, out_w), f32).at[:, :F].set(params["b_out"])
    psel = jnp.zeros((3, out_w), f32).at[jnp.arange(3),
                                         F + jnp.arange(3)].set(1.0)

    wed_e = params["W_ed"].astype(edge_dtype)
    we2_e = params["W_e2"].astype(edge_dtype)
    wx_e = params["W_x"].astype(edge_dtype)

    ins = (blk_nnz,
           a_i, a_j, h_p, pos_p, pos_p, pos_T, adj_e,
           wed_e, we2_e, params["b_e2"], wx_e,
           params["W_hh"], params["W_ha"], params["b_h1"], params["W_h2"],
           params["b_h2"], w_out_p, b_out_p, psel)

    def row(shape):
        return pl.BlockSpec(shape, lambda i, j, n: (i, 0))

    def col(shape):
        return pl.BlockSpec(shape, lambda i, j, n: (j, 0))

    def whole(shape):
        return pl.BlockSpec(shape, lambda i, j, n: (0, 0))

    in_specs = [
        row((blk_i, H)),                                    # a_i
        col((blk_j, H)),                                    # a_j
        row((blk_i, F)),                                    # h_i
        row((blk_i, 3)),                                    # pos_i
        col((blk_j, 3)),                                    # pos_j (rows)
        pl.BlockSpec((3, blk_j), lambda i, j, n: (0, j)),   # pos^T (cols)
        pl.BlockSpec((blk_i, blk_j), lambda i, j, n: (i, j)),  # adjacency
        whole((1, H)), whole((H, H)), whole((1, H)), whole((H, 1)),
        whole((F, H)), whole((H, H)), whole((1, H)), whole((H, F)),
        whole((1, F)),
        whole((F, out_w)), whole((1, out_w)), whole((3, out_w)),
    ]

    slab = pl.pallas_call(
        _equiv_encoder_kernel,
        out_shape=jax.ShapeDtypeStruct((n_pad, out_w), f32),
        grid_spec=pltpu.PrefetchScalarGridSpec(
            num_scalar_prefetch=1,
            grid=(ni, nj),
            in_specs=in_specs,
            out_specs=pl.BlockSpec((blk_i, out_w), lambda i, j, n: (i, 0)),
            scratch_shapes=[pltpu.VMEM((blk_i, H), f32),
                            pltpu.VMEM((blk_i, 3), f32)]),
        compiler_params=pltpu.CompilerParams(
            dimension_semantics=("parallel", "arbitrary"),
            vmem_limit_bytes=40 * 1024 * 1024),   # safe for v7x's 64 MiB VMEM
    )(*ins)

    eps_h = slab[:N, :F]
    pos_delta = slab[:, F:F + 3]

    eps_pos = pl.pallas_call(
        _readout_mean_kernel,
        out_shape=jax.ShapeDtypeStruct((n_pad, 3), f32),
    )(seg, seg.T, cnt, pos_delta)

    return eps_h, eps_pos[:N]


# --------------------------------------------------------------------------- #
# Pure-JAX reference mirroring the kernel math (bf16 edge path on v6e/v7x)
# --------------------------------------------------------------------------- #
def reference(params, t, h, pos, edge_index, index, num_graphs,
              edge_dtype=jnp.bfloat16):
    f32 = jnp.float32
    N, F = h.shape
    H = params["W_e2"].shape[0]
    h = h.astype(f32)
    pos = pos.astype(f32)
    t_node = jnp.reshape(t, (-1,))[index][:, None].astype(f32)
    adj = jnp.zeros((N, N), f32).at[edge_index[0], edge_index[1]].set(1.0)
    seg = (index[None, :] == jnp.arange(num_graphs)[:, None]).astype(f32)
    cnt = jnp.maximum(jnp.sum(seg, axis=1, keepdims=True), 1.0)

    a_i = (jnp.dot(h, params["W_ehi"], precision=_HI) + t_node * params["W_et"]
           + params["b_e1"]).astype(edge_dtype)
    a_j = jnp.dot(h, params["W_ehj"], precision=_HI).astype(edge_dtype)

    rel = pos[:, None, :] - pos[None, :, :]
    d2 = jnp.sum(rel * rel, axis=-1, keepdims=True)

    pre = (a_i[:, None, :] + a_j[None, :, :]
           + d2.astype(edge_dtype) * params["W_ed"].astype(edge_dtype)[None, :, :])
    m1 = _silu(pre)
    x2 = (jnp.dot(m1.reshape(N * N, H), params["W_e2"].astype(edge_dtype),
                  preferred_element_type=f32) + params["b_e2"])
    m2 = _silu(x2.astype(edge_dtype)).reshape(N, N, H)
    m2 = m2 * adj[:, :, None].astype(edge_dtype)
    agg = jnp.sum(m2.astype(f32), axis=1)
    coef = jnp.dot(m2.reshape(N * N, H), params["W_x"].astype(edge_dtype),
                   preferred_element_type=f32).reshape(N, N, 1)
    pos_delta = jnp.sum(coef * rel / (jnp.sqrt(d2) + 1.0), axis=1)

    u = _silu(jnp.dot(h, params["W_hh"], precision=_HI)
              + jnp.dot(agg, params["W_ha"], precision=_HI) + params["b_h1"])
    h_enc = h + jnp.dot(u, params["W_h2"], precision=_HI) + params["b_h2"]
    eps_h = jnp.dot(h_enc, params["W_out"], precision=_HI) + params["b_out"]

    mean = jnp.dot(seg, pos_delta, precision=_HI) / cnt
    eps_pos = pos_delta - jnp.dot(seg.T, mean, precision=_HI)
    return eps_h, eps_pos


if __name__ == "__main__":
    # 8 nodes, 4 node features, hidden 128 (lane-dense), 2 graphs
    N, F, H, G = 8, 4, 128, 2

    key = jax.random.PRNGKey(0)
    k_p, k_h, k_x, k_t = jax.random.split(key, 4)

    params = init_params(k_p, F, H)

    h = jax.random.normal(k_h, (N, F), jnp.float32)
    pos = jax.random.normal(k_x, (N, 3), jnp.float32)
    t = jax.random.uniform(k_t, (G,), jnp.float32)
    index = jnp.array([0, 0, 0, 0, 1, 1, 1, 1], jnp.int32)
    # bidirectional ring inside each 4-node graph
    src = jnp.array([0, 1, 1, 2, 2, 3, 3, 0, 4, 5, 5, 6, 6, 7, 7, 4], jnp.int32)
    dst = jnp.array([1, 0, 2, 1, 3, 2, 0, 3, 5, 4, 6, 5, 7, 6, 4, 7], jnp.int32)
    edge_index = jnp.stack([src, dst], axis=0)

    eps_h, eps_pos = equivariant_parameterization(
        params, t, h, pos, edge_index, index, num_graphs=G, context=None)
    jax.block_until_ready((eps_h, eps_pos))

    ref_h, ref_pos = reference(params, t, h, pos, edge_index, index, G)
    # bf16 edge MLP in both kernel and reference; eps_pos additionally carries
    # the approx-reciprocal distance factor and the rewritten j-reduction.
    np.testing.assert_allclose(np.asarray(eps_h), np.asarray(ref_h),
                               rtol=1e-2, atol=1e-2)
    np.testing.assert_allclose(np.asarray(eps_pos), np.asarray(ref_pos),
                               rtol=1e-2, atol=1e-2)
    assert eps_h.shape == (N, F) and eps_pos.shape == (N, 3)

    print("KERNEL_OK")
</pallas_src>

<mosaic_0001>
module attributes {stable_mosaic.version = 11 : i64} {
  func.func @_equiv_encoder_kernel(%arg0: i32, %arg1: i32, %arg2: memref<1x1xi32, #tpu.memory_space<smem>>, %arg3: memref<8x128xbf16, #tpu.memory_space<vmem>>, %arg4: memref<8x128xbf16, #tpu.memory_space<vmem>>, %arg5: memref<8x4xf32, #tpu.memory_space<vmem>>, %arg6: memref<8x3xf32, #tpu.memory_space<vmem>>, %arg7: memref<8x3xf32, #tpu.memory_space<vmem>>, %arg8: memref<3x8xf32, #tpu.memory_space<vmem>>, %arg9: memref<8x8xbf16, #tpu.memory_space<vmem>>, %arg10: memref<1x128xbf16, #tpu.memory_space<vmem>>, %arg11: memref<128x128xbf16, #tpu.memory_space<vmem>>, %arg12: memref<1x128xf32, #tpu.memory_space<vmem>>, %arg13: memref<128x1xbf16, #tpu.memory_space<vmem>>, %arg14: memref<4x128xf32, #tpu.memory_space<vmem>>, %arg15: memref<128x128xf32, #tpu.memory_space<vmem>>, %arg16: memref<1x128xf32, #tpu.memory_space<vmem>>, %arg17: memref<128x4xf32, #tpu.memory_space<vmem>>, %arg18: memref<1x4xf32, #tpu.memory_space<vmem>>, %arg19: memref<4x128xf32, #tpu.memory_space<vmem>>, %arg20: memref<1x128xf32, #tpu.memory_space<vmem>>, %arg21: memref<3x128xf32, #tpu.memory_space<vmem>>, %arg22: memref<8x128xf32, #tpu.memory_space<vmem>>, %arg23: memref<8x128xf32, #tpu.memory_space<vmem>>, %arg24: memref<8x3xf32, #tpu.memory_space<vmem>>) attributes {dimension_semantics = [#tpu.dimension_semantics<parallel>, #tpu.dimension_semantics<arbitrary>], iteration_bounds = array<i64: 1, 1>, scalar_prefetch = 1 : i64, scratch_operands = 2 : i64, tpu.core_type = #tpu.core_type<tc>, window_params = [{transform_indices = @transform_0, window_bounds = array<i64: 8, 128>}, {transform_indices = @transform_1, window_bounds = array<i64: 8, 128>}, {transform_indices = @transform_2, window_bounds = array<i64: 8, 4>}, {transform_indices = @transform_3, window_bounds = array<i64: 8, 3>}, {transform_indices = @transform_4, window_bounds = array<i64: 8, 3>}, {transform_indices = @transform_5, window_bounds = array<i64: 3, 8>}, {transform_indices = @transform_6, window_bounds = array<i64: 8, 8>}, {pipeline_mode = #tpu.pipeline_mode<synchronous>, transform_indices = @transform_7, window_bounds = array<i64: 1, 128>}, {pipeline_mode = #tpu.pipeline_mode<synchronous>, transform_indices = @transform_8, window_bounds = array<i64: 128, 128>}, {pipeline_mode = #tpu.pipeline_mode<synchronous>, transform_indices = @transform_9, window_bounds = array<i64: 1, 128>}, {pipeline_mode = #tpu.pipeline_mode<synchronous>, transform_indices = @transform_10, window_bounds = array<i64: 128, 1>}, {pipeline_mode = #tpu.pipeline_mode<synchronous>, transform_indices = @transform_11, window_bounds = array<i64: 4, 128>}, {pipeline_mode = #tpu.pipeline_mode<synchronous>, transform_indices = @transform_12, window_bounds = array<i64: 128, 128>}, {pipeline_mode = #tpu.pipeline_mode<synchronous>, transform_indices = @transform_13, window_bounds = array<i64: 1, 128>}, {pipeline_mode = #tpu.pipeline_mode<synchronous>, transform_indices = @transform_14, window_bounds = array<i64: 128, 4>}, {pipeline_mode = #tpu.pipeline_mode<synchronous>, transform_indices = @transform_15, window_bounds = array<i64: 1, 4>}, {pipeline_mode = #tpu.pipeline_mode<synchronous>, transform_indices = @transform_16, window_bounds = array<i64: 4, 128>}, {pipeline_mode = #tpu.pipeline_mode<synchronous>, transform_indices = @transform_17, window_bounds = array<i64: 1, 128>}, {pipeline_mode = #tpu.pipeline_mode<synchronous>, transform_indices = @transform_18, window_bounds = array<i64: 3, 128>}, {transform_indices = @transform_19, window_bounds = array<i64: 8, 128>}]} {
    %c0_i32 = arith.constant 0 : i32
    %0 = arith.cmpi eq, %arg1, %c0_i32 : i32
    %1 = arith.extui %0 : i1 to i32
    %c0_i32_0 = arith.constant 0 : i32
    %2 = arith.cmpi ne, %1, %c0_i32_0 : i32
    scf.if %2 {
      %cst = arith.constant 0.000000e+00 : f32
      %12 = vector.broadcast %cst : f32 to vector<8x128xf32>
      %c0 = arith.constant 0 : index
      %c0_5 = arith.constant 0 : index
      %13 = vector.load %arg23[%c0, %c0_5] : memref<8x128xf32, #tpu.memory_space<vmem>>, vector<8x128xf32>
      tpu.vector_store %arg23[%c0, %c0_5], %12 {strides = array<i32>} : memref<8x128xf32, #tpu.memory_space<vmem>>, vector<8x128xf32>,
      %cst_6 = arith.constant 0.000000e+00 : f32
      %14 = vector.broadcast %cst_6 : f32 to vector<8x3xf32>
      %c0_7 = arith.constant 0 : index
      %c0_8 = arith.constant 0 : index
      %15 = vector.load %arg24[%c0_7, %c0_8] : memref<8x3xf32, #tpu.memory_space<vmem>>, vector<8x3xf32>
      tpu.vector_store %arg24[%c0_7, %c0_8], %14 {strides = array<i32>} : memref<8x3xf32, #tpu.memory_space<vmem>>, vector<8x3xf32>,
    } else {
    }
    %3 = arith.index_cast %arg0 : i32 to index
    %4 = arith.index_cast %arg1 : i32 to index
    %5 = memref.load %arg2[%3, %4] : memref<1x1xi32, #tpu.memory_space<smem>>
    %c0_i32_1 = arith.constant 0 : i32
    %6 = arith.cmpi sgt, %5, %c0_i32_1 : i32
    %7 = arith.extui %6 : i1 to i32
    %c0_i32_2 = arith.constant 0 : i32
    %8 = arith.cmpi ne, %7, %c0_i32_2 : i32
    scf.if %8 {
      %c0 = arith.constant 0 : index
      %c0_5 = arith.constant 0 : index
      %12 = vector.load %arg6[%c0, %c0_5] : memref<8x3xf32, #tpu.memory_space<vmem>>, vector<8x3xf32>
      %c0_6 = arith.constant 0 : index
      %c0_7 = arith.constant 0 : index
      %13 = vector.load %arg8[%c0_6, %c0_7] : memref<3x8xf32, #tpu.memory_space<vmem>>, vector<3x8xf32>
      %14 = vector.extract_strided_slice %12 {offsets = [0, 0], sizes = [8, 1], strides = [1, 1]} : vector<8x3xf32> to vector<8x1xf32>
      %15 = vector.extract_strided_slice %13 {offsets = [0, 0], sizes = [1, 8], strides = [1, 1]} : vector<3x8xf32> to vector<1x8xf32>
      %16 = vector.broadcast %14 : vector<8x1xf32> to vector<8x8xf32>
      %17 = vector.broadcast %15 : vector<1x8xf32> to vector<8x8xf32>
      %18 = arith.subf %16, %17 : vector<8x8xf32>
      %19 = vector.extract_strided_slice %12 {offsets = [0, 1], sizes = [8, 1], strides = [1, 1]} : vector<8x3xf32> to vector<8x1xf32>
      %20 = vector.extract_strided_slice %13 {offsets = [1, 0], sizes = [1, 8], strides = [1, 1]} : vector<3x8xf32> to vector<1x8xf32>
      %21 = vector.broadcast %19 : vector<8x1xf32> to vector<8x8xf32>
      %22 = vector.broadcast %20 : vector<1x8xf32> to vector<8x8xf32>
      %23 = arith.subf %21, %22 : vector<8x8xf32>
      %24 = vector.extract_strided_slice %12 {offsets = [0, 2], sizes = [8, 1], strides = [1, 1]} : vector<8x3xf32> to vector<8x1xf32>
      %25 = vector.extract_strided_slice %13 {offsets = [2, 0], sizes = [1, 8], strides = [1, 1]} : vector<3x8xf32> to vector<1x8xf32>
      %26 = vector.broadcast %24 : vector<8x1xf32> to vector<8x8xf32>
      %27 = vector.broadcast %25 : vector<1x8xf32> to vector<8x8xf32>
      %28 = arith.subf %26, %27 : vector<8x8xf32>
      %29 = arith.mulf %18, %18 : vector<8x8xf32>
      %30 = arith.mulf %23, %23 : vector<8x8xf32>
      %31 = arith.addf %29, %30 : vector<8x8xf32>
      %32 = arith.mulf %28, %28 : vector<8x8xf32>
      %33 = arith.addf %31, %32 : vector<8x8xf32>
      %34 = math.sqrt %33 : vector<8x8xf32>
      %cst = arith.constant 1.000000e+00 : f32
      %35 = vector.broadcast %cst : f32 to vector<8x8xf32>
      %36 = arith.addf %34, %35 : vector<8x8xf32>
      %37 = tpu.reciprocal %36 {approx = true} : vector<8x8xf32> -> vector<8x8xf32>
      %c0_8 = arith.constant 0 : index
      %c0_9 = arith.constant 0 : index
      %38 = vector.load %arg3[%c0_8, %c0_9] : memref<8x128xbf16, #tpu.memory_space<vmem>>, vector<8x128xbf16>
      %39 = vector.shape_cast %38 : vector<8x128xbf16> to vector<8x1x128xbf16>
      %c0_10 = arith.constant 0 : index
      %c0_11 = arith.constant 0 : index
      %40 = vector.load %arg4[%c0_10, %c0_11] : memref<8x128xbf16, #tpu.memory_space<vmem>>, vector<8x128xbf16>
      %41 = vector.shape_cast %40 : vector<8x128xbf16> to vector<1x8x128xbf16>
      %42 = vector.broadcast %39 : vector<8x1x128xbf16> to vector<8x8x128xbf16>
      %43 = vector.broadcast %41 : vector<1x8x128xbf16> to vector<8x8x128xbf16>
      %44 = arith.addf %42, %43 : vector<8x8x128xbf16>
      %45 = arith.truncf %33 : vector<8x8xf32> to vector<8x8xbf16>
      %46 = vector.shape_cast %45 : vector<8x8xbf16> to vector<8x8x1xbf16>
      %c0_12 = arith.constant 0 : index
      %c0_13 = arith.constant 0 : index
      %47 = vector.load %arg10[%c0_12, %c0_13] : memref<1x128xbf16, #tpu.memory_space<vmem>>, vector<1x128xbf16>
      %48 = vector.shape_cast %47 : vector<1x128xbf16> to vector<1x1x128xbf16>
      %49 = vector.broadcast %46 : vector<8x8x1xbf16> to vector<8x8x128xbf16>
      %50 = vector.broadcast %48 : vector<1x1x128xbf16> to vector<8x8x128xbf16>
      %51 = arith.mulf %49, %50 : vector<8x8x128xbf16>
      %52 = arith.addf %44, %51 : vector<8x8x128xbf16>
      %53 = arith.negf %52 : vector<8x8x128xbf16>
      %54 = math.exp %53 : vector<8x8x128xbf16>
      %cst_14 = arith.constant 1.000000e+00 : bf16
      %55 = vector.broadcast %cst_14 : bf16 to vector<8x8x128xbf16>
      %56 = arith.addf %55, %54 : vector<8x8x128xbf16>
      %57 = arith.divf %55, %56 : vector<8x8x128xbf16>
      %58 = arith.mulf %52, %57 : vector<8x8x128xbf16>
      %59 = vector.shape_cast %58 : vector<8x8x128xbf16> to vector<64x128xbf16>
      %c0_15 = arith.constant 0 : index
      %c0_16 = arith.constant 0 : index
      %60 = vector.load %arg11[%c0_15, %c0_16] : memref<128x128xbf16, #tpu.memory_space<vmem>>, vector<128x128xbf16>
      %cst_17 = arith.constant dense<0.000000e+00> : vector<64x128xf32>
      %61 = tpu.matmul %59, %60, %cst_17 {dimension_numbers = #tpu.dot_dimension_numbers<[1], [0], [0], [1], [0, 0, 1, 1], [], []>} : vector<64x128xbf16>, vector<128x128xbf16>, vector<64x128xf32> -> vector<64x128xf32>
      %c0_18 = arith.constant 0 : index
      %c0_19 = arith.constant 0 : index
      %62 = vector.load %arg12[%c0_18, %c0_19] : memref<1x128xf32, #tpu.memory_space<vmem>>, vector<1x128xf32>
      %63 = vector.broadcast %62 : vector<1x128xf32> to vector<64x128xf32>
      %64 = arith.addf %61, %63 : vector<64x128xf32>
      %65 = arith.truncf %64 : vector<64x128xf32> to vector<64x128xbf16>
      %66 = arith.negf %65 : vector<64x128xbf16>
      %67 = math.exp %66 : vector<64x128xbf16>
      %cst_20 = arith.constant 1.000000e+00 : bf16
      %68 = vector.broadcast %cst_20 : bf16 to vector<64x128xbf16>
      %69 = arith.addf %68, %67 : vector<64x128xbf16>
      %70 = arith.divf %68, %69 : vector<64x128xbf16>
      %71 = arith.mulf %65, %70 : vector<64x128xbf16>
      %72 = vector.shape_cast %71 : vector<64x128xbf16> to vector<8x8x128xbf16>
      %c0_21 = arith.constant 0 : index
      %c0_22 = arith.constant 0 : index
      %73 = vector.load %arg9[%c0_21, %c0_22] : memref<8x8xbf16, #tpu.memory_space<vmem>>, vector<8x8xbf16>
      %74 = vector.shape_cast %73 : vector<8x8xbf16> to vector<8x8x1xbf16>
      %75 = vector.broadcast %74 : vector<8x8x1xbf16> to vector<8x8x128xbf16>
      %76 = arith.mulf %72, %75 : vector<8x8x128xbf16>
      %c0_23 = arith.constant 0 : index
      %c0_24 = arith.constant 0 : index
      %77 = vector.load %arg23[%c0_23, %c0_24] : memref<8x128xf32, #tpu.memory_space<vmem>>, vector<8x128xf32>
      %78 = arith.extf %76 : vector<8x8x128xbf16> to vector<8x8x128xf32>
      %cst_25 = arith.constant dense<0.000000e+00> : vector<8x128xf32>
      %79 = vector.multi_reduction <add>, %78, %cst_25 [1] : vector<8x8x128xf32> to vector<8x128xf32>
      %80 = arith.addf %77, %79 : vector<8x128xf32>
      %c0_26 = arith.constant 0 : index
      %c0_27 = arith.constant 0 : index
      %81 = vector.load %arg23[%c0_26, %c0_27] : memref<8x128xf32, #tpu.memory_space<vmem>>, vector<8x128xf32>
      tpu.vector_store %arg23[%c0_26, %c0_27], %80 {strides = array<i32>} : memref<8x128xf32, #tpu.memory_space<vmem>>, vector<8x128xf32>,
      %82 = vector.shape_cast %76 : vector<8x8x128xbf16> to vector<64x128xbf16>
      %c0_28 = arith.constant 0 : index
      %c0_29 = arith.constant 0 : index
      %83 = vector.load %arg13[%c0_28, %c0_29] : memref<128x1xbf16, #tpu.memory_space<vmem>>, vector<128x1xbf16>
      %cst_30 = arith.constant dense<0.000000e+00> : vector<64x1xf32>
      %84 = tpu.matmul %82, %83, %cst_30 {dimension_numbers = #tpu.dot_dimension_numbers<[1], [0], [0], [1], [0, 0, 1, 1], [], []>} : vector<64x128xbf16>, vector<128x1xbf16>, vector<64x1xf32> -> vector<64x1xf32>
      %85 = vector.shape_cast %84 : vector<64x1xf32> to vector<8x8x1xf32>
      %86 = vector.shape_cast %37 : vector<8x8xf32> to vector<8x8x1xf32>
      %87 = arith.mulf %85, %86 : vector<8x8x1xf32>
      %cst_31 = arith.constant dense<0.000000e+00> : vector<8x1xf32>
      %88 = vector.multi_reduction <add>, %87, %cst_31 [1] : vector<8x8x1xf32> to vector<8x1xf32>
      %c0_32 = arith.constant 0 : index
      %c0_33 = arith.constant 0 : index
      %89 = vector.load %arg7[%c0_32, %c0_33] : memref<8x3xf32, #tpu.memory_space<vmem>>, vector<8x3xf32>
      %90 = vector.shape_cast %89 : vector<8x3xf32> to vector<1x8x3xf32>
      %91 = vector.broadcast %87 : vector<8x8x1xf32> to vector<8x8x3xf32>
      %92 = vector.broadcast %90 : vector<1x8x3xf32> to vector<8x8x3xf32>
      %93 = arith.mulf %91, %92 : vector<8x8x3xf32>
      %cst_34 = arith.constant dense<0.000000e+00> : vector<8x3xf32>
      %94 = vector.multi_reduction <add>, %93, %cst_34 [1] : vector<8x8x3xf32> to vector<8x3xf32>
      %c0_35 = arith.constant 0 : index
      %c0_36 = arith.constant 0 : index
      %95 = vector.load %arg24[%c0_35, %c0_36] : memref<8x3xf32, #tpu.memory_space<vmem>>, vector<8x3xf32>
      %96 = vector.broadcast %88 : vector<8x1xf32> to vector<8x3xf32>
      %97 = arith.mulf %12, %96 : vector<8x3xf32>
      %98 = arith.subf %97, %94 : vector<8x3xf32>
      %99 = arith.addf %95, %98 : vector<8x3xf32>
      %c0_37 = arith.constant 0 : index
      %c0_38 = arith.constant 0 : index
      %100 = vector.load %arg24[%c0_37, %c0_38] : memref<8x3xf32, #tpu.memory_space<vmem>>, vector<8x3xf32>
      tpu.vector_store %arg24[%c0_37, %c0_38], %99 {strides = array<i32>} : memref<8x3xf32, #tpu.memory_space<vmem>>, vector<8x3xf32>,
    } else {
    }
    %c0_i32_3 = arith.constant 0 : i32
    %9 = arith.cmpi eq, %arg1, %c0_i32_3 : i32
    %10 = arith.extui %9 : i1 to i32
    %c0_i32_4 = arith.constant 0 : i32
    %11 = arith.cmpi ne, %10, %c0_i32_4 : i32
    scf.if %11 {
      %c0 = arith.constant 0 : index
      %c0_5 = arith.constant 0 : index
      %12 = vector.load %arg5[%c0, %c0_5] : memref<8x4xf32, #tpu.memory_space<vmem>>, vector<8x4xf32>
      %c0_6 = arith.constant 0 : index
      %c0_7 = arith.constant 0 : index
      %13 = vector.load %arg14[%c0_6, %c0_7] : memref<4x128xf32, #tpu.memory_space<vmem>>, vector<4x128xf32>
      %cst = arith.constant dense<0.000000e+00> : vector<8x128xf32>
      %14 = tpu.matmul %12, %13, %cst {dimension_numbers = #tpu.dot_dimension_numbers<[1], [0], [0], [1], [0, 0, 1, 1], [], []>, precision = #tpu.contract_precision<fp32>} : vector<8x4xf32>, vector<4x128xf32>, vector<8x128xf32> -> vector<8x128xf32>
      %c0_8 = arith.constant 0 : index
      %c0_9 = arith.constant 0 : index
      %15 = vector.load %arg23[%c0_8, %c0_9] : memref<8x128xf32, #tpu.memory_space<vmem>>, vector<8x128xf32>
      %c0_10 = arith.constant 0 : index
      %c0_11 = arith.constant 0 : index
      %16 = vector.load %arg15[%c0_10, %c0_11] : memref<128x128xf32, #tpu.memory_space<vmem>>, vector<128x128xf32>
      %cst_12 = arith.constant dense<0.000000e+00> : vector<8x128xf32>
      %17 = tpu.matmul %15, %16, %cst_12 {dimension_numbers = #tpu.dot_dimension_numbers<[1], [0], [0], [1], [0, 0, 1, 1], [], []>, precision = #tpu.contract_precision<fp32>} : vector<8x128xf32>, vector<128x128xf32>, vector<8x128xf32> -> vector<8x128xf32>
      %18 = arith.addf %14, %17 : vector<8x128xf32>
      %c0_13 = arith.constant 0 : index
      %c0_14 = arith.constant 0 : index
      %19 = vector.load %arg16[%c0_13, %c0_14] : memref<1x128xf32, #tpu.memory_space<vmem>>, vector<1x128xf32>
      %20 = vector.broadcast %19 : vector<1x128xf32> to vector<8x128xf32>
      %21 = arith.addf %18, %20 : vector<8x128xf32>
      %22 = arith.negf %21 : vector<8x128xf32>
      %23 = math.exp %22 : vector<8x128xf32>
      %cst_15 = arith.constant 1.000000e+00 : f32
      %24 = vector.broadcast %cst_15 : f32 to vector<8x128xf32>
      %25 = arith.addf %24, %23 : vector<8x128xf32>
      %26 = arith.divf %24, %25 : vector<8x128xf32>
      %27 = arith.mulf %21, %26 : vector<8x128xf32>
      %c0_16 = arith.constant 0 : index
      %c0_17 = arith.constant 0 : index
      %28 = vector.load %arg17[%c0_16, %c0_17] : memref<128x4xf32, #tpu.memory_space<vmem>>, vector<128x4xf32>
      %cst_18 = arith.constant dense<0.000000e+00> : vector<8x4xf32>
      %29 = tpu.matmul %27, %28, %cst_18 {dimension_numbers = #tpu.dot_dimension_numbers<[1], [0], [0], [1], [0, 0, 1, 1], [], []>, precision = #tpu.contract_precision<fp32>} : vector<8x128xf32>, vector<128x4xf32>, vector<8x4xf32> -> vector<8x4xf32>
      %30 = arith.addf %12, %29 : vector<8x4xf32>
      %c0_19 = arith.constant 0 : index
      %c0_20 = arith.constant 0 : index
      %31 = vector.load %arg18[%c0_19, %c0_20] : memref<1x4xf32, #tpu.memory_space<vmem>>, vector<1x4xf32>
      %32 = vector.broadcast %31 : vector<1x4xf32> to vector<8x4xf32>
      %33 = arith.addf %30, %32 : vector<8x4xf32>
      %c0_21 = arith.constant 0 : index
      %c0_22 = arith.constant 0 : index
      %34 = vector.load %arg19[%c0_21, %c0_22] : memref<4x128xf32, #tpu.memory_space<vmem>>, vector<4x128xf32>
      %cst_23 = arith.constant dense<0.000000e+00> : vector<8x128xf32>
      %35 = tpu.matmul %33, %34, %cst_23 {dimension_numbers = #tpu.dot_dimension_numbers<[1], [0], [0], [1], [0, 0, 1, 1], [], []>, precision = #tpu.contract_precision<fp32>} : vector<8x4xf32>, vector<4x128xf32>, vector<8x128xf32> -> vector<8x128xf32>
      %c0_24 = arith.constant 0 : index
      %c0_25 = arith.constant 0 : index
      %36 = vector.load %arg20[%c0_24, %c0_25] : memref<1x128xf32, #tpu.memory_space<vmem>>, vector<1x128xf32>
      %37 = vector.broadcast %36 : vector<1x128xf32> to vector<8x128xf32>
      %38 = arith.addf %35, %37 : vector<8x128xf32>
      %c0_26 = arith.constant 0 : index
      %c0_27 = arith.constant 0 : index
      %39 = vector.load %arg24[%c0_26, %c0_27] : memref<8x3xf32, #tpu.memory_space<vmem>>, vector<8x3xf32>
      %c0_28 = arith.constant 0 : index
      %c0_29 = arith.constant 0 : index
      %40 = vector.load %arg21[%c0_28, %c0_29] : memref<3x128xf32, #tpu.memory_space<vmem>>, vector<3x128xf32>
      %cst_30 = arith.constant dense<0.000000e+00> : vector<8x128xf32>
      %41 = tpu.matmul %39, %40, %cst_30 {dimension_numbers = #tpu.dot_dimension_numbers<[1], [0], [0], [1], [0, 0, 1, 1], [], []>, precision = #tpu.contract_precision<fp32>} : vector<8x3xf32>, vector<3x128xf32>, vector<8x128xf32> -> vector<8x128xf32>
      %42 = arith.addf %38, %41 : vector<8x128xf32>
      %c0_31 = arith.constant 0 : index
      %c0_32 = arith.constant 0 : index
      %43 = vector.load %arg22[%c0_31, %c0_32] : memref<8x128xf32, #tpu.memory_space<vmem>>, vector<8x128xf32>
      tpu.vector_store %arg22[%c0_31, %c0_32], %42 {strides = array<i32>} : memref<8x128xf32, #tpu.memory_space<vmem>>, vector<8x128xf32>,
    } else {
    }
    return
  }
  func.func @transform_0(%arg0: i32, %arg1: i32, %arg2: memref<1x1xi32, #tpu.memory_space<smem>>) -> (i32, i32) {
    %c0_i32 = arith.constant 0 : i32
    %c0_i32_0 = arith.constant 0 : i32
    return %arg0, %c0_i32 : i32, i32
  }
  func.func @transform_1(%arg0: i32, %arg1: i32, %arg2: memref<1x1xi32, #tpu.memory_space<smem>>) -> (i32, i32) {
    %c0_i32 = arith.constant 0 : i32
    %c0_i32_0 = arith.constant 0 : i32
    return %arg1, %c0_i32 : i32, i32
  }
  func.func @transform_2(%arg0: i32, %arg1: i32, %arg2: memref<1x1xi32, #tpu.memory_space<smem>>) -> (i32, i32) {
    %c0_i32 = arith.constant 0 : i32
    %c0_i32_0 = arith.constant 0 : i32
    return %arg0, %c0_i32 : i32, i32
  }
  func.func @transform_3(%arg0: i32, %arg1: i32, %arg2: memref<1x1xi32, #tpu.memory_space<smem>>) -> (i32, i32) {
    %c0_i32 = arith.constant 0 : i32
    %c0_i32_0 = arith.constant 0 : i32
    return %arg0, %c0_i32 : i32, i32
  }
  func.func @transform_4(%arg0: i32, %arg1: i32, %arg2: memref<1x1xi32, #tpu.memory_space<smem>>) -> (i32, i32) {
    %c0_i32 = arith.constant 0 : i32
    %c0_i32_0 = arith.constant 0 : i32
    return %arg1, %c0_i32 : i32, i32
  }
  func.func @transform_5(%arg0: i32, %arg1: i32, %arg2: memref<1x1xi32, #tpu.memory_space<smem>>) -> (i32, i32) {
    %c0_i32 = arith.constant 0 : i32
    %c0_i32_0 = arith.constant 0 : i32
    return %c0_i32, %arg1 : i32, i32
  }
  func.func @transform_6(%arg0: i32, %arg1: i32, %arg2: memref<1x1xi32, #tpu.memory_space<smem>>) -> (i32, i32) {
    %c0_i32 = arith.constant 0 : i32
    return %arg0, %arg1 : i32, i32
  }
  func.func @transform_7(%arg0: i32, %arg1: i32, %arg2: memref<1x1xi32, #tpu.memory_space<smem>>) -> (i32, i32) {
    %c0_i32 = arith.constant 0 : i32
    %c0_i32_0 = arith.constant 0 : i32
    %c0_i32_1 = arith.constant 0 : i32
    return %c0_i32, %c0_i32_0 : i32, i32
  }
  func.func @transform_8(%arg0: i32, %arg1: i32, %arg2: memref<1x1xi32, #tpu.memory_space<smem>>) -> (i32, i32) {
    %c0_i32 = arith.constant 0 : i32
    %c0_i32_0 = arith.constant 0 : i32
    %c0_i32_1 = arith.constant 0 : i32
    return %c0_i32, %c0_i32_0 : i32, i32
  }
  func.func @transform_9(%arg0: i32, %arg1: i32, %arg2: memref<1x1xi32, #tpu.memory_space<smem>>) -> (i32, i32) {
    %c0_i32 = arith.constant 0 : i32
    %c0_i32_0 = arith.constant 0 : i32
    %c0_i32_1 = arith.constant 0 : i32
    return %c0_i32, %c0_i32_0 : i32, i32
  }
  func.func @transform_10(%arg0: i32, %arg1: i32, %arg2: memref<1x1xi32, #tpu.memory_space<smem>>) -> (i32, i32) {
    %c0_i32 = arith.constant 0 : i32
    %c0_i32_0 = arith.constant 0 : i32
    %c0_i32_1 = arith.constant 0 : i32
    return %c0_i32, %c0_i32_0 : i32, i32
  }
  func.func @transform_11(%arg0: i32, %arg1: i32, %arg2: memref<1x1xi32, #tpu.memory_space<smem>>) -> (i32, i32) {
    %c0_i32 = arith.constant 0 : i32
    %c0_i32_0 = arith.constant 0 : i32
    %c0_i32_1 = arith.constant 0 : i32
    return %c0_i32, %c0_i32_0 : i32, i32
  }
  func.func @transform_12(%arg0: i32, %arg1: i32, %arg2: memref<1x1xi32, #tpu.memory_space<smem>>) -> (i32, i32) {
    %c0_i32 = arith.constant 0 : i32
    %c0_i32_0 = arith.constant 0 : i32
    %c0_i32_1 = arith.constant 0 : i32
    return %c0_i32, %c0_i32_0 : i32, i32
  }
  func.func @transform_13(%arg0: i32, %arg1: i32, %arg2: memref<1x1xi32, #tpu.memory_space<smem>>) -> (i32, i32) {
    %c0_i32 = arith.constant 0 : i32
    %c0_i32_0 = arith.constant 0 : i32
    %c0_i32_1 = arith.constant 0 : i32
    return %c0_i32, %c0_i32_0 : i32, i32
  }
  func.func @transform_14(%arg0: i32, %arg1: i32, %arg2: memref<1x1xi32, #tpu.memory_space<smem>>) -> (i32, i32) {
    %c0_i32 = arith.constant 0 : i32
    %c0_i32_0 = arith.constant 0 : i32
    %c0_i32_1 = arith.constant 0 : i32
    return %c0_i32, %c0_i32_0 : i32, i32
  }
  func.func @transform_15(%arg0: i32, %arg1: i32, %arg2: memref<1x1xi32, #tpu.memory_space<smem>>) -> (i32, i32) {
    %c0_i32 = arith.constant 0 : i32
    %c0_i32_0 = arith.constant 0 : i32
    %c0_i32_1 = arith.constant 0 : i32
    return %c0_i32, %c0_i32_0 : i32, i32
  }
  func.func @transform_16(%arg0: i32, %arg1: i32, %arg2: memref<1x1xi32, #tpu.memory_space<smem>>) -> (i32, i32) {
    %c0_i32 = arith.constant 0 : i32
    %c0_i32_0 = arith.constant 0 : i32
    %c0_i32_1 = arith.constant 0 : i32
    return %c0_i32, %c0_i32_0 : i32, i32
  }
  func.func @transform_17(%arg0: i32, %arg1: i32, %arg2: memref<1x1xi32, #tpu.memory_space<smem>>) -> (i32, i32) {
    %c0_i32 = arith.constant 0 : i32
    %c0_i32_0 = arith.constant 0 : i32
    %c0_i32_1 = arith.constant 0 : i32
    return %c0_i32, %c0_i32_0 : i32, i32
  }
  func.func @transform_18(%arg0: i32, %arg1: i32, %arg2: memref<1x1xi32, #tpu.memory_space<smem>>) -> (i32, i32) {
    %c0_i32 = arith.constant 0 : i32
    %c0_i32_0 = arith.constant 0 : i32
    %c0_i32_1 = arith.constant 0 : i32
    return %c0_i32, %c0_i32_0 : i32, i32
  }
  func.func @transform_19(%arg0: i32, %arg1: i32, %arg2: memref<1x1xi32, #tpu.memory_space<smem>>) -> (i32, i32) {
    %c0_i32 = arith.constant 0 : i32
    %c0_i32_0 = arith.constant 0 : i32
    return %arg0, %c0_i32 : i32, i32
  }
}

</mosaic_0001>

<bundles_post_ra>
// kernel: tpu_custom_call.1
= control target key start
LH: loop header
LB: loop body
LE: loop exit
PB: predicated region body
PF: predicated region fallthrough
CT: control target
= control target key end

     0   :  { %s6175_s0 = inlined_call_operand.<no memory space> [shape: s32[1,1], index: 0, kind: input, shape index: {}]   ;;  %s6176_s1 = inlined_call_operand.vmem [shape: bf16[8,128], index: 1, kind: input, shape index: {}]   ;;  %s6177_s2 = inlined_call_operand.vmem [shape: bf16[8,128], index: 2, kind: input, shape index: {}]   ;;  %s6178_s3 = inlined_call_operand.vmem [shape: f32[8,4], index: 3, kind: input, shape index: {}]   ;;  %s6179_s4 = inlined_call_operand.vmem [shape: f32[8,3], index: 4, kind: input, shape index: {}]   ;;  %s6180_s5 = inlined_call_operand.vmem [shape: f32[8,3], index: 5, kind: input, shape index: {}]   ;;  %s6181_s6 = inlined_call_operand.vmem [shape: f32[3,8], index: 6, kind: input, shape index: {}]   ;;  %s6182_s7 = inlined_call_operand.vmem [shape: bf16[8,8], index: 7, kind: input, shape index: {}]   ;;  %s6183_s8 = inlined_call_operand.vmem [shape: bf16[1,128], index: 8, kind: input, shape index: {}]   ;;  %s6184_s9 = inlined_call_operand.vmem [shape: bf16[128,128], index: 9, kind: input, shape index: {}]   ;;  %s6185_s10 = inlined_call_operand.vmem [shape: f32[1,128], index: 10, kind: input, shape index: {}]   ;;  %s6186_s11 = inlined_call_operand.vmem [shape: bf16[128,1], index: 11, kind: input, shape index: {}]   ;;  %s6187_s12 = inlined_call_operand.vmem [shape: f32[4,128], index: 12, kind: input, shape index: {}]   ;;  %s6188_s13 = inlined_call_operand.vmem [shape: f32[128,128], index: 13, kind: input, shape index: {}]   ;;  %s6189_s14 = inlined_call_operand.vmem [shape: f32[1,128], index: 14, kind: input, shape index: {}]   ;;  %s6190_s15 = inlined_call_operand.vmem [shape: f32[128,4], index: 15, kind: input, shape index: {}]   ;;  %s6191_s16 = inlined_call_operand.vmem [shape: f32[1,4], index: 16, kind: input, shape index: {}]   ;;  %s6192_s17 = inlined_call_operand.vmem [shape: f32[4,128], index: 17, kind: input, shape index: {}]   ;;  %s6193_s18 = inlined_call_operand.vmem [shape: f32[1,128], index: 18, kind: input, shape index: {}]   ;;  %s6194_s19 = inlined_call_operand.vmem [shape: f32[3,128], index: 19, kind: input, shape index: {}]   ;;  %s6195_s20 = inlined_call_operand.hbm [shape: f32[8,128], index: 20, kind: output, shape index: {}]  }
   0x1   :  { %6208 = sst [smem:[#allocation9_spill]] %s6175_s0 }
   0x2   :  { %6209 = sst [smem:[#allocation10_spill]] %s6176_s1 }
   0x3   :  { %6210 = sst [smem:[#allocation11_spill]] %s6177_s2 }
   0x4   :  { %6211 = sst [smem:[#allocation12_spill]] %s6178_s3 }
   0x5   :  { %6212 = sst [smem:[#allocation13_spill]] %s6179_s4 }
   0x6   :  { %26 = vsyncpa [#allocation7], 0  ;;  %vm72_vm0 = vcmask 23552   ;;  %v4948_v0 = vmov 0.0   ;;  %s6213_s23 = sld [smem:[#allocation9_spill]] }
   0x7   :  { %71 = vst [vmem:[#allocation2] sm:$0xff] %v4948_v0  ;;  %73 = vst.msk [vmem:[#allocation3] sm:$0xff] %vm72_vm0, %v4948_v0 }
   0xc   :  { %p3964_p0 = scmp.le.s32.totalorder %s6213_s23, 0 }
   0xd   :  { %s6214_s25 = sld [smem:[#allocation13_spill]] (!%p3964_p0) }
   0xe   :  { %81 = sbr.rel (%p3964_p0) target bundleno = 940 (0x3ac), region = 85  ;;  %s6215_s4 = sld [smem:[#allocation10_spill]] (!%p3964_p0) }
   0xf   :  { %s6216_s0 = sld [smem:[#allocation11_spill]] (!%p3964_p0) }
  0x13   :  { %v82_v1 = vld [vmem:[%s6214_s25] sm:$0xff]  ;;  %v4949_v2 = vmov 0   ;;  %v4950_v3 = vmov 2   ;;  %v4951_v4 = vmov 1   ;;  %v89_v5 = vlaneseq  ;;  %v4853_v39 = vld [vmem:[%s6184_s9 + $0x38] sm:$0xff]   ;;  %v4854_v47 = vld [vmem:[%s6184_s9 + $0x30] sm:$0xff]  }
  0x14   :  { %4848 = vset.pattern.permute.xlu0 %v4949_v2  ;;  %4850 = vset.pattern.permute.xlu1 %v4950_v3  ;;  %v83_v9 = vld [vmem:[%s6181_s6] sm:$0x7]  ;;  %v4855_v52 = vld [vmem:[%s6184_s9 + $0x28] sm:$0xff]   ;;  %v4857_v58 = vld [vmem:[%s6184_s9 + $0x18] sm:$0xff]   ;;  %vm776_vm3 = vcmask 1041409   ;;  %vm778_vm4 = vcmask 1042434  }
  0x15   :  { %86 = vperm.xlu0 %4848, %v82_v1   ;;  %104 = vperm.xlu1 %4850, %v82_v1   ;;  %v5069_v6 = vshrl.u32 %v89_v5, 7  ;;  %v640_v31 = vld [vmem:[%s6182_s7] sm:$0xf]  ;;  %v4858_v61 = vld [vmem:[%s6184_s9 + $0x10] sm:$0xff]   ;;  %vm780_vm5 = vcmask 1043459   ;;  %vm782_vm6 = vcmask 1044484  }
  0x16   :  { %v642_v35 = vpack.i.b16 %v640_v31, %v640_v31  ;;  %v651_v43 = vshrl.u32 %v640_v31, 16  ;;  %4283 = vmatprep.subr.bf16.mxu0 %v4853_v39  ;;  %v4856_v55 = vld [vmem:[%s6184_s9 + $0x20] sm:$0xff]   ;;  %vm784_vm7 = vcmask 1045509   ;;  %vm786_vm8 = vcmask 1046534  }
  0x17   :  { %v5072_v7 = vsub.s32 0, %v5069_v6  ;;  %v5075_v8 = vsub.s32 2, %v5069_v6  ;;  %v5081_v10 = vsub.s32 1, %v5069_v6  ;;  %v5094_v34 = vsub.s32 3, %v5069_v6  ;;  %4284 = vmatpush3.bf16.msra.mxu0 %v4853_v39  ;;  %v4860_v5 = vld [vmem:[%s6184_s9] sm:$0xff]  }
  0x18   :  { %v652_v50 = vpack.i.b16 %v651_v43, %v651_v43  ;;  %4285 = vmatprep.subr.bf16.mxu0 %v4854_v47  ;;  %v976_v3 = vsub.s32 4, %v5069_v6  ;;  %vm788_vm9 = vcmask 1047559   ;;  %vm1010_vm10 = vcmask 7168  }
  0x19   :  { %4849 = vset.pattern.permute.xlu0 %v4951_v4  ;;  %4851 = vset.pattern.permute.xlu1 %v4949_v2  ;;  %v92_v11 = vrot.slane %v83_v9, %v5072_v7  ;;  %v110_v13 = vrot.slane %v83_v9, %v5075_v8  ;;  %v101_v15 = vrot.slane %v83_v9, %v5081_v10 }
  0x1a   :  { %95 = vperm.xlu0 %4849, %v82_v1   ;;  %v647_v42 = vrot.slane %v642_v35, %v5072_v7  ;;  %v664_v49 = vrot.slane %v642_v35, %v5081_v10  ;;  %v657_v53 = vrot.slane %v652_v50, %v5072_v7  ;;  %v678_v54 = vrot.slane %v642_v35, %v5075_v8  ;;  %v4859_v1 = vld [vmem:[%s6184_s9 + $0x8] sm:$0xff]  }
  0x1b   :  { %4286 = vmatpush3.bf16.msra.mxu0 %v4854_v47  ;;  %v671_v56 = vrot.slane %v652_v50, %v5081_v10  ;;  %v692_v57 = vrot.slane %v642_v35, %v5094_v34  ;;  %v685_v59 = vrot.slane %v652_v50, %v5075_v8  ;;  %v699_v63 = vrot.slane %v652_v50, %v5094_v34  ;;  %v160_v50 = vld [vmem:[%s6216_s0] sm:$0xf] }
  0x1c   :  { %4287 = vmatprep.subr.bf16.mxu0 %v4855_v52 }
  0x1e   :  { %4852 = vset.pattern.permute.xlu0 %v4949_v2 }
  0x1f   :  { %4288 = vmatpush3.bf16.msra.mxu0 %v4855_v52 }
  0x20   :  { %4289 = vmatprep.subr.bf16.mxu0 %v4856_v55 }
  0x23   :  { %4290 = vmatpush3.bf16.msra.mxu0 %v4856_v55 }
  0x24   :  { %4291 = vmatprep.subr.bf16.mxu0 %v4857_v58 }
  0x27   :  { %4292 = vmatpush3.bf16.msra.mxu0 %v4857_v58 }
  0x28   :  { %4293 = vmatprep.subr.bf16.mxu0 %v4858_v61 }
  0x2b   :  { %4294 = vmatpush3.bf16.msra.mxu0 %v4858_v61 }
  0x2c   :  { %4295 = vmatprep.subr.bf16.mxu0 %v4859_v1 }
  0x2f   :  { %4296 = vmatpush3.bf16.msra.mxu0 %v4859_v1 }
  0x30   :  { %4297 = vmatprep.subr.bf16.mxu0 %v4860_v5 }
  0x33   :  { %4298 = vmatpush3.bf16.msra.mxu0 %v4860_v5 }
  0x90   :  { %v87_v12 = vpop.permute.xlu0 %86  ;;  %v105_v14 = vpop.permute.xlu1 %104 }
  0x91   :  { %v93_v16 = vsub.f32 %v87_v12, %v92_v11  ;;  %v111_v17 = vsub.f32 %v105_v14, %v110_v13  ;;  %v990_v11 = vsub.s32 6, %v5069_v6  ;;  %v983_v12 = vsub.s32 5, %v5069_v6 }
  0x92   :  { %v997_v14 = vsub.s32 7, %v5069_v6 }
  0x93   :  { %v112_v20 = vmul.f32 %v93_v16, %v93_v16  ;;  %v115_v22 = vmul.f32 %v111_v17, %v111_v17  ;;  %v4952_v16 = vmov 1966171168  }
  0x94   :  { %v137_v17 = vunpack.c.l.s4 %v4952_v16 }
  0x95   :  { %v96_v18 = vpop.permute.xlu0 %95 }
  0x96   :  { %v102_v19 = vsub.f32 %v96_v18, %v101_v15  ;;  %v138_v18 = vunpack.c.0.s8 %v137_v17 }
  0x98   :  { %v113_v21 = vmul.f32 %v102_v19, %v102_v19  ;;  %v3965_v19 = vld.sshfl [vmem:[%s6215_s4] sm:$0x33 pattern:$0x75316420] }
  0x9a   :  { %v114_v23 = vadd.f32 %v113_v21, %v112_v20  ;;  %v135_v20 = vcombine.high %v3965_v19, %v3965_v19  ;;  %v141_v21 = vsub.s32 %v138_v18, %v5069_v6 }
  0x9c   :  { %v116_v24 = vadd.f32 %v115_v22, %v114_v23  ;;  %v149_v22 = vrot.slane %v135_v20, %v141_v21  ;;  %v142_v23 = vrot.slane %v3965_v19, %v141_v21 }
  0x9e   :  { %4869 = vrsqrt.f32 %v116_v24  ;;  %v265_v25 = vpack.c.bf16 %v116_v24, %v116_v24  ;;  %vm119_vm1 = vcmp.eq.f32.partialorder %v116_v24, inf  ;;  %v122_v41 = vand.u32 2147483648, %v116_v24 }
  0x9f   :  { %vm121_vm2 = vcmp.eq.f32.partialorder %v116_v24, 0.0 }
  0xa0   :  { %v267_v26 = vpack.i.b16 %v265_v25, %v265_v25  ;;  %v276_v27 = vshrl.u32 %v265_v25, 16  ;;  %v3967_v25 = vpack.i.b16 %v149_v22, %v149_v22 }
  0xa2   :  { %v289_v28 = vrot.slane %v267_v26, %v5081_v10  ;;  %v272_v29 = vrot.slane %v267_v26, %v5072_v7  ;;  %v277_v30 = vpack.i.b16 %v276_v27, %v276_v27  ;;  %v303_v32 = vrot.slane %v267_v26, %v5075_v8 }
  0xa3   :  { %v317_v37 = vrot.slane %v267_v26, %v5094_v34  ;;  %v3966_v26 = vpack.i.b16 %v142_v23, %v142_v23  ;;  %v153_v27 = vunpack.i.h.s16 %v142_v23  ;;  %v180_v31 = vrot.slane %v3967_v25, %v5072_v7 }
  0xa4   :  { %291 = vbcast.lane.c.b16.xlu0 %v289_v28, 256  ;;  %274 = vbcast.lane.c.b16.xlu1 %v272_v29, 256  ;;  %v282_v33 = vrot.slane %v277_v30, %v5072_v7  ;;  %v296_v38 = vrot.slane %v277_v30, %v5081_v10  ;;  %v310_v46 = vrot.slane %v277_v30, %v5075_v8 }
  0xa5   :  { %v324_v51 = vrot.slane %v277_v30, %v5094_v34  ;;  %v151_v29 = vcombine.high %v149_v22, %v149_v22  ;;  %v155_v30 = vunpack.i.h.s16 %v149_v22 }
  0xa7   :  { %v3969_v35 = vpack.i.b16 %v151_v29, %v151_v29 }
  0xa8   :  { %305 = vbcast.lane.c.b16.xlu0 %v303_v32, 256  ;;  %284 = vbcast.lane.c.b16.xlu1 %v282_v33, 256  ;;  %v172_v32 = vrot.slane %v3966_v26, %v5072_v7  ;;  %v162_v33 = vpack.i.b16 %v153_v27, %v153_v27 }
  0xa9   :  { %v196_v43 = vrot.slane %v3969_v35, %v5072_v7 }
  0xaa   :  { %v202_v39 = vpack.i.b16 %v172_v32, %v172_v32 }
  0xab   :  { %v4870_v36 = vpop.eup %4869 }
  0xac   :  { %v118_v40 = vmul.f32 %v4870_v36, %v116_v24  ;;  %319 = vbcast.lane.c.b16.xlu0 %v317_v37, 256  ;;  %298 = vbcast.lane.c.b16.xlu1 %v296_v38, 256  ;;  %v164_v36 = vpack.i.b16 %v155_v30, %v155_v30  ;;  %v216_v38 = vpack.i.b16 %v180_v31, %v180_v31 }
  0xad   :  { %v207_v47 = vrot.slane %v202_v39, %v5072_v7 }
  0xae   :  { %v120_v44 = vsel %vm119_vm1, %v116_v24, %v118_v40  ;;  %v150_v24 = vcombine.high %v142_v23, %v142_v23  ;;  %v176_v40 = vrot.slane %v162_v33, %v5072_v7 }
  0xaf   :  { %v123_v45 = vsel %vm121_vm2, %v122_v41, %v120_v44  ;;  %v184_v44 = vrot.slane %v164_v36, %v5072_v7 }
  0xb0   :  { %v124_v48 = vadd.f32 1.0, %v123_v45  ;;  %312 = vbcast.lane.c.b16.xlu1 %v310_v46, 256  ;;  %649 = vbcast.lane.c.b16.xlu0 %v647_v42, 256  ;;  %v3968_v28 = vpack.i.b16 %v150_v24, %v150_v24  ;;  %v157_v37 = vunpack.i.h.s16 %v150_v24  ;;  %v221_v46 = vrot.slane %v216_v38, %v5072_v7 }
  0xb2   :  { %4871 = vrcp.f32 %v124_v48  ;;  %v188_v6 = vrot.slane %v3968_v28, %v5072_v7  ;;  %v166_v45 = vpack.i.b16 %v157_v37, %v157_v37  ;;  %v209_v48 = vpack.i.b16 %v176_v40, %v176_v40 }
  0xb4   :  { %326 = vbcast.lane.c.b16.xlu1 %v324_v51, 256  ;;  %666 = vbcast.lane.c.b16.xlu0 %v664_v49, 256  ;;  %v230_v42 = vpack.i.b16 %v188_v6, %v188_v6  ;;  %v159_v49 = vunpack.i.h.s16 %v151_v29  ;;  %v192_v55 = vrot.slane %v166_v45, %v5072_v7  ;;  %v214_v58 = vrot.slane %v209_v48, %v5072_v7 }
  0xb6   :  { %v235_v52 = vrot.slane %v230_v42, %v5072_v7 }
  0xb8   :  { %659 = vbcast.lane.c.b16.xlu1 %v657_v53, 256  ;;  %680 = vbcast.lane.c.b16.xlu0 %v678_v54, 256  ;;  %v244_v53 = vpack.i.b16 %v196_v43, %v196_v43  ;;  %v223_v54 = vpack.i.b16 %v184_v44, %v184_v44  ;;  %v261_v1 = vadd.bf16 %v235_v52, %v160_v50 }
  0xbc   :  { %673 = vbcast.lane.c.b16.xlu1 %v671_v56, 256  ;;  %694 = vbcast.lane.c.b16.xlu0 %v692_v57, 256  ;;  %v259_v56 = vadd.bf16 %v221_v46, %v160_v50  ;;  %v257_v57 = vadd.bf16 %v207_v47, %v160_v50 }
  0xbf   :  { %v4872_v60 = vpop.eup %4871 }
  0xc0   :  { %v949_v62 = vrot.slane %v4872_v60, %v5072_v7  ;;  %687 = vbcast.lane.c.b16.xlu1 %v685_v59, 256  ;;  %v963_v2 = vrot.slane %v4872_v60, %v5075_v8  ;;  %v956_v4 = vrot.slane %v4872_v60, %v5081_v10  ;;  %v977_v9 = vrot.slane %v4872_v60, %v976_v3 }
  0xc1   :  { %v970_v8 = vrot.slane %v4872_v60, %v5094_v34  ;;  %v991_v13 = vrot.slane %v4872_v60, %v990_v11  ;;  %v984_v10 = vrot.slane %v4872_v60, %v983_v12  ;;  %v998_v15 = vrot.slane %v4872_v60, %v997_v14  ;;  %v328_v34 = vld [vmem:[%s6183_s8] sm:$0x1] }
  0xc2   :  { %951 = vbcast.lane.b32.xlu0 %v949_v62, 256  ;;  %v330_v41 = vpack.i.b16 %v328_v34, %v328_v34  ;;  %v168_v59 = vpack.i.b16 %v159_v49, %v159_v49  ;;  %v228_v3 = vrot.slane %v223_v54, %v5072_v7  ;;  %v258_v11 = vadd.bf16 %v214_v58, %v160_v50 }
  0xc4   :  { %701 = vbcast.lane.c.b16.xlu1 %v699_v63, 256  ;;  %v335_v51 = vrot.slane %v330_v41, %v5072_v7  ;;  %v260_v18 = vadd.bf16 %v228_v3, %v160_v50 }
  0xc6   :  { %965 = vbcast.lane.b32.xlu0 %v963_v2, 256  ;;  %v249_v2 = vrot.slane %v244_v53, %v5072_v7 }
  0xc8   :  { %958 = vbcast.lane.b32.xlu1 %v956_v4, 256  ;;  %v237_v4 = vpack.i.b16 %v192_v55, %v192_v55  ;;  %v263_v17 = vadd.bf16 %v249_v2, %v160_v50 }
  0xca   :  { %979 = vbcast.lane.b32.xlu0 %v977_v9, 256  ;;  %v242_v19 = vrot.slane %v237_v4, %v5072_v7 }
  0xcc   :  { %972 = vbcast.lane.b32.xlu1 %v970_v8, 256  ;;  %v200_v8 = vrot.slane %v168_v59, %v5072_v7  ;;  %v262_v29 = vadd.bf16 %v242_v19, %v160_v50 }
  0xce   :  { %993 = vbcast.lane.b32.xlu0 %v991_v13, 256  ;;  %v251_v22 = vpack.i.b16 %v200_v8, %v200_v8 }
  0xd0   :  { %986 = vbcast.lane.b32.xlu1 %v984_v10, 256  ;;  %v256_v32 = vrot.slane %v251_v22, %v5072_v7 }
  0xd2   :  { %v264_v37 = vadd.bf16 %v256_v32, %v160_v50  ;;  %v4868_v32 = vld [vmem:[%s6186_s11] sm:$0xff]  }
  0xd4   :  { %1000 = vbcast.lane.b32.xlu1 %v998_v15, 256 }
 0x116   :  { %v292_v60 = vpop.permute.xlu0 %291  ;;  %v275_v61 = vpop.permute.xlu1 %274 }
 0x117   :  { %v338_v62 = vmul.bf16 %v335_v51, %v292_v60  ;;  %v336_v63 = vmul.bf16 %v335_v51, %v275_v61 }
 0x119   :  { %v5164_v5 = vadd.bf16 %v338_v62, %v259_v56  ;;  %v5166_v9 = vadd.bf16 %v336_v63, %v257_v57 }
 0x11a   :  { %v306_v12 = vpop.permute.xlu0 %305  ;;  %v285_v13 = vpop.permute.xlu1 %284 }
 0x11b   :  { %v3972_v10 = vmul.bf16 3216621497, %v5164_v5  ;;  %v3970_v14 = vmul.bf16 3216621497, %v5166_v9  ;;  %v340_v15 = vmul.bf16 %v335_v51, %v306_v12  ;;  %v337_v16 = vmul.bf16 %v335_v51, %v285_v13 }
 0x11d   :  { %4873 = vpow.bf16 %v3972_v10  ;;  %v5172_v20 = vadd.bf16 %v340_v15, %v261_v1  ;;  %v345_v21 = vadd.bf16 %v337_v16, %v258_v11 }
 0x11e   :  { %4875 = vpow.bf16 %v3970_v14  ;;  %v320_v23 = vpop.permute.xlu0 %319  ;;  %v299_v24 = vpop.permute.xlu1 %298 }
 0x11f   :  { %v3974_v25 = vmul.bf16 3216621497, %v5172_v20  ;;  %v3971_v26 = vmul.bf16 3216621497, %v345_v21  ;;  %v342_v27 = vmul.bf16 %v335_v51, %v320_v23  ;;  %v339_v28 = vmul.bf16 %v335_v51, %v299_v24 }
 0x121   :  { %4877 = vpow.bf16 %v3974_v25  ;;  %v5175_v30 = vadd.bf16 %v342_v27, %v263_v17  ;;  %v347_v31 = vadd.bf16 %v339_v28, %v260_v18  ;;  %v4863_v27 = vld [vmem:[%s6186_s11 + $0x28] sm:$0xff]   ;;  %v4864_v28 = vld [vmem:[%s6186_s11 + $0x20] sm:$0xff]  }
 0x122   :  { %4879 = vpow.bf16 %v3971_v26  ;;  %v313_v33 = vpop.permute.xlu1 %312 }
 0x123   :  { %v3976_v34 = vmul.bf16 3216621497, %v5175_v30  ;;  %v3973_v6 = vmul.bf16 3216621497, %v347_v31  ;;  %v341_v35 = vmul.bf16 %v335_v51, %v313_v33 }
 0x125   :  { %4881 = vpow.bf16 %v3976_v34  ;;  %v349_v36 = vadd.bf16 %v341_v35, %v262_v29  ;;  %v4865_v29 = vld [vmem:[%s6186_s11 + $0x18] sm:$0xff]   ;;  %v3978_v34 = vld [vmem:[%s6185_s10] ss:$0 sm:$0xff] }
 0x126   :  { %4883 = vpow.bf16 %v3973_v6  ;;  %v327_v38 = vpop.permute.xlu1 %326 }
 0x127   :  { %v3975_v39 = vmul.bf16 3216621497, %v349_v36  ;;  %v343_v40 = vmul.bf16 %v335_v51, %v327_v38 }
 0x129   :  { %4885 = vpow.bf16 %v3975_v39  ;;  %v351_v41 = vadd.bf16 %v343_v40, %v264_v37 }
 0x12b   :  { %v4874_v42 = vpop.eup %4873  ;;  %v3977_v43 = vmul.bf16 3216621497, %v351_v41 }
 0x12c   :  { %v4876_v44 = vpop.eup %4875  ;;  %v386_v45 = vadd.bf16 1065369472, %v4874_v42 }
 0x12d   :  { %4887 = vpow.bf16 %v3977_v43  ;;  %v384_v7 = vadd.bf16 1065369472, %v4876_v44 }
 0x12f   :  { %v4878_v46 = vpop.eup %4877  ;;  %4889 = vrcp.bf16 %v384_v7 }
 0x130   :  { %v4880_v47 = vpop.eup %4879  ;;  %4891 = vrcp.bf16 %v386_v45  ;;  %v388_v49 = vadd.bf16 1065369472, %v4878_v46 }
 0x131   :  { %v385_v48 = vadd.bf16 1065369472, %v4880_v47 }
 0x133   :  { %v4882_v52 = vpop.eup %4881  ;;  %4893 = vrcp.bf16 %v385_v48 }
 0x134   :  { %v4884_v50 = vpop.eup %4883  ;;  %v390_v53 = vadd.bf16 1065369472, %v4882_v52  ;;  %4895 = vrcp.bf16 %v388_v49 }
 0x135   :  { %v387_v54 = vadd.bf16 1065369472, %v4884_v50 }
 0x137   :  { %v4886_v51 = vpop.eup %4885  ;;  %4897 = vrcp.bf16 %v387_v54 }
 0x138   :  { %v389_v55 = vadd.bf16 1065369472, %v4886_v51  ;;  %4899 = vrcp.bf16 %v390_v53 }
 0x13a   :  { %4901 = vrcp.bf16 %v389_v55 }
 0x13b   :  { %v4888_v56 = vpop.eup %4887 }
 0x13c   :  { %v391_v57 = vadd.bf16 1065369472, %v4888_v56 }
 0x13d   :  { %v4890_v58 = vpop.eup %4889 }
 0x13e   :  { %4903 = vrcp.bf16 %v391_v57  ;;  %v4892_v59 = vpop.eup %4891  ;;  %v393_v60 = vmul.bf16 1065369472, %v4890_v58 }
 0x13f   :  { %v397_v1 = vmul.bf16 1065369472, %v4892_v59 }
 0x140   :  { %v408_v2 = vmul.bf16 %v393_v60, %v5166_v9 }
 0x141   :  { %v4894_v61 = vpop.eup %4893  ;;  %v410_v14 = vmul.bf16 %v397_v1, %v5164_v5  ;;  %v4861_v5 = vld [vmem:[%s6186_s11 + $0x38] sm:$0xff]   ;;  %v650_v1 = vpop.permute.xlu0 %649 }
 0x142   :  { %v395_v62 = vmul.bf16 1065369472, %v4894_v61  ;;  %v4896_v63 = vpop.eup %4895  ;;  %4307 = vmatprep.subr.bf16.mxu1 %v4861_v5 }
 0x143   :  { %v401_v13 = vmul.bf16 1065369472, %v4896_v63  ;;  %4308 = vmatpush3.bf16.msra.mxu1 %v4861_v5 }
 0x144   :  { %v409_v3 = vmul.bf16 %v395_v62, %v345_v21 }
 0x145   :  { %v4898_v4 = vpop.eup %4897  ;;  %v412_v18 = vmul.bf16 %v401_v13, %v5172_v20  ;;  %v4862_v20 = vld [vmem:[%s6186_s11 + $0x30] sm:$0xff]  }
 0x146   :  { %v399_v11 = vmul.bf16 1065369472, %v4898_v4  ;;  %v3979_v8 = vcombine.low %v408_v2, %v409_v3  ;;  %v4900_v12 = vpop.eup %4899  ;;  %4309 = vmatprep.subr.bf16.mxu1 %v4862_v20  ;;  %v660_v2 = vpop.permute.xlu1 %659 }
 0x147   :  { %v405_v19 = vmul.bf16 1065369472, %v4900_v12  ;;  %4310 = vmatpush3.bf16.msra.mxu1 %v4862_v20 }
 0x148   :  { %v4902_v10 = vpop.eup %4901  ;;  %v411_v15 = vmul.bf16 %v399_v11, %v347_v31  ;;  %4299 = vmatprep.mubr.bf16.mxu0 %v3979_v8  ;;  %4311 = vmatprep.subr.bf16.mxu1 %v4863_v27  ;;  %v4867_v31 = vld [vmem:[%s6186_s11 + $0x8] sm:$0xff]   ;;  %v667_v8 = vpop.permute.xlu0 %666 }
 0x149   :  { %v403_v16 = vmul.bf16 1065369472, %v4902_v10  ;;  %v414_v24 = vmul.bf16 %v405_v19, %v5175_v30  ;;  %v4866_v30 = vld [vmem:[%s6186_s11 + $0x10] sm:$0xff]  }
 0x14a   :  { %v3980_v17 = vcombine.low %v410_v14, %v411_v15  ;;  %v674_v12 = vpop.permute.xlu1 %673 }
 0x14b   :  { %v413_v22 = vmul.bf16 %v403_v16, %v349_v36  ;;  %4312 = vmatpush3.bf16.msra.mxu1 %v4863_v27 }
 0x14c   :  { %v4904_v23 = vpop.eup %4903  ;;  %4300 = vmatmul.mubr.bf16.vlgmr.msra.gmra.mxu0 %v3980_v17  ;;  %4313 = vmatprep.subr.bf16.mxu1 %v4864_v28 }
 0x14d   :  { %v407_v9 = vmul.bf16 1065369472, %v4904_v23  ;;  %v3981_v21 = vcombine.low %v412_v18, %v413_v22 }
 0x14f   :  { %v415_v25 = vmul.bf16 %v407_v9, %v351_v41  ;;  %4303 = vmatprep.mubr.bf16.mxu0 %v3981_v21  ;;  %4314 = vmatpush3.bf16.msra.mxu1 %v4864_v28  ;;  %v681_v9 = vpop.permute.xlu0 %680  ;;  %v688_v21 = vpop.permute.xlu1 %687 }
 0x150   :  { %4315 = vmatprep.subr.bf16.mxu1 %v4865_v29 }
 0x151   :  { %v3982_v26 = vcombine.low %v414_v24, %v415_v25 }
 0x153   :  { %4316 = vmatpush3.bf16.msra.mxu1 %v4865_v29 }
 0x154   :  { %4304 = vmatmul.mubr.bf16.gmra.mxu0 %v3982_v26  ;;  %4317 = vmatprep.subr.bf16.mxu1 %v4866_v30 }
 0x157   :  { %4318 = vmatpush3.bf16.msra.mxu1 %v4866_v30 }
 0x158   :  { %4319 = vmatprep.subr.bf16.mxu1 %v4867_v31 }
 0x15b   :  { %4320 = vmatpush3.bf16.msra.mxu1 %v4867_v31 }
 0x15c   :  { %4321 = vmatprep.subr.bf16.mxu1 %v4868_v32 }
 0x15f   :  { %4322 = vmatpush3.bf16.msra.mxu1 %v4868_v32 }
 0x20c   :  { %v4301_v33 = vpop.f32.mrf.mxu0 }
 0x20d   :  { %v554_v36 = vadd.f32 %v4301_v33, %v3978_v34 }
 0x20e   :  { %v545_v6 = vpop.f32.mrf.mxu0 }
 0x20f   :  { %v546_v39 = vadd.f32 %v3978_v34, %v545_v6 }
 0x210   :  { %v4302_v35 = vpop.f32.mrf.mxu0 }
 0x211   :  { %v557_v37 = vadd.f32 %v4302_v35, %v3978_v34 }
 0x212   :  { %v548_v38 = vpop.f32.mrf.mxu0 }
 0x213   :  { %v577_v40 = vpack.c.bf16 %v557_v37, %v554_v36  ;;  %v549_v41 = vadd.f32 %v3978_v34, %v548_v38 }
 0x214   :  { %v4305_v42 = vpop.f32.mrf.mxu0 }
 0x215   :  { %v3992_v43 = vmul.bf16 3216621497, %v577_v40  ;;  %v576_v44 = vpack.c.bf16 %v549_v41, %v546_v39  ;;  %v570_v47 = vadd.f32 %v4305_v42, %v3978_v34  ;;  %v695_v39 = vpop.permute.xlu0 %694 }
 0x216   :  { %v561_v7 = vpop.f32.mrf.mxu0 }
 0x217   :  { %4905 = vpow.bf16 %v3992_v43  ;;  %v3991_v45 = vmul.bf16 3216621497, %v576_v44  ;;  %v562_v52 = vadd.f32 %v3978_v34, %v561_v7  ;;  %v702_v43 = vpop.permute.xlu1 %701 }
 0x218   :  { %v4306_v46 = vpop.f32.mrf.mxu0 }
 0x219   :  { %4907 = vpow.bf16 %v3991_v45  ;;  %v573_v48 = vadd.f32 %v4306_v46, %v3978_v34 }
 0x21a   :  { %v564_v49 = vpop.f32.mrf.mxu0 }
 0x21b   :  { %v579_v50 = vpack.c.bf16 %v573_v48, %v570_v47  ;;  %v565_v53 = vadd.f32 %v3978_v34, %v564_v49 }
 0x21d   :  { %v3994_v54 = vmul.bf16 3216621497, %v579_v50  ;;  %v578_v51 = vpack.c.bf16 %v565_v53, %v562_v52 }
 0x21f   :  { %4909 = vpow.bf16 %v3994_v54  ;;  %v3993_v55 = vmul.bf16 3216621497, %v578_v51 }
 0x221   :  { %4911 = vpow.bf16 %v3993_v55 }
 0x225   :  { %v4906_v56 = vpop.eup %4905 }
 0x226   :  { %v597_v57 = vadd.bf16 1065369472, %v4906_v56 }
 0x227   :  { %v4908_v58 = vpop.eup %4907 }
 0x228   :  { %4913 = vrcp.bf16 %v597_v57  ;;  %v596_v59 = vadd.bf16 1065369472, %v4908_v58 }
 0x22a   :  { %4915 = vrcp.bf16 %v596_v59 }
 0x22d   :  { %v4910_v60 = vpop.eup %4909 }
 0x22e   :  { %v599_v61 = vadd.bf16 1065369472, %v4910_v60 }
 0x22f   :  { %v4912_v62 = vpop.eup %4911 }
 0x230   :  { %4917 = vrcp.bf16 %v599_v61  ;;  %v598_v63 = vadd.bf16 1065369472, %v4912_v62 }
 0x232   :  { %4919 = vrcp.bf16 %v598_v63 }
 0x236   :  { %v4914_v3 = vpop.eup %4913 }
 0x237   :  { %v603_v4 = vmul.bf16 1065369472, %v4914_v3 }
 0x238   :  { %v4916_v11 = vpop.eup %4915 }
 0x239   :  { %v609_v13 = vmul.bf16 %v603_v4, %v577_v40  ;;  %v601_v10 = vmul.bf16 1065369472, %v4916_v11 }
 0x23b   :  { %v3997_v14 = vcombine.low %v609_v13, %v609_v13  ;;  %v3998_v15 = vcombine.high %v609_v13, %v609_v13  ;;  %v608_v16 = vmul.bf16 %v601_v10, %v576_v44 }
 0x23d   :  { %v3995_v17 = vcombine.low %v608_v16, %v608_v16  ;;  %v3996_v18 = vcombine.high %v608_v16, %v608_v16  ;;  %v705_v19 = vmul.bf16 %v3997_v14, %v667_v8  ;;  %v706_v22 = vmul.bf16 %v3998_v15, %v674_v12 }
 0x23e   :  { %v4918_v23 = vpop.eup %4917 }
 0x23f   :  { %v607_v24 = vmul.bf16 1065369472, %v4918_v23  ;;  %v703_v25 = vmul.bf16 %v3995_v17, %v650_v1  ;;  %v704_v26 = vmul.bf16 %v3996_v18, %v660_v2  ;;  %v714_v5 = vunpack.c.l.bf16 %v705_v19 }
 0x240   :  { %v4920_v20 = vpop.eup %4919  ;;  %v715_v27 = vunpack.c.l.bf16 %v706_v22  ;;  %v4004_v6 = vcombine.low %v705_v19, %v706_v22 }
 0x241   :  { %v611_v28 = vmul.bf16 %v607_v24, %v579_v50  ;;  %v605_v29 = vmul.bf16 1065369472, %v4920_v20  ;;  %v712_v30 = vunpack.c.l.bf16 %v703_v25  ;;  %v713_v31 = vunpack.c.l.bf16 %v704_v26 }
 0x242   :  { %v4003_v32 = vcombine.low %v703_v25, %v704_v26  ;;  %v732_v33 = vrot.slane %v714_v5, 4  ;;  %v738_v34 = vrot.slane %v715_v27, 4 }
 0x243   :  { %v4001_v35 = vcombine.low %v611_v28, %v611_v28  ;;  %v4002_v36 = vcombine.high %v611_v28, %v611_v28  ;;  %v610_v37 = vmul.bf16 %v605_v29, %v578_v51  ;;  %v720_v38 = vrot.slane %v712_v30, 4 }
 0x244   :  { %v726_v40 = vrot.slane %v713_v31, 4  ;;  %4323 = vmatprep.mubr.bf16.mxu1 %v4003_v32  ;;  %v733_v41 = vadd.f32 %v732_v33, %v714_v5  ;;  %v739_v42 = vadd.f32 %v738_v34, %v715_v27 }
 0x245   :  { %v3999_v44 = vcombine.low %v610_v37, %v610_v37  ;;  %v4000_v7 = vcombine.high %v610_v37, %v610_v37  ;;  %v721_v45 = vadd.f32 %v720_v38, %v712_v30  ;;  %4324 = vmatmul.mubr.bf16.vlgmr.msra.gmra.mxu1 %v4004_v6  ;;  %v709_v46 = vmul.bf16 %v4001_v35, %v695_v39  ;;  %v711_v39 = vld [vmem:[#allocation2] sm:$0xff] }
 0x246   :  { %v727_v47 = vadd.f32 %v726_v40, %v713_v31  ;;  %v734_v48 = vrot.slane %v733_v41, 2  ;;  %v740_v49 = vrot.slane %v739_v42, 2  ;;  %v710_v52 = vmul.bf16 %v4002_v36, %v702_v43 }
 0x247   :  { %v722_v50 = vrot.slane %v721_v45, 2  ;;  %v707_v53 = vmul.bf16 %v3999_v44, %v681_v9  ;;  %v708_v54 = vmul.bf16 %v4000_v7, %v688_v21  ;;  %v718_v51 = vunpack.c.l.bf16 %v709_v46  ;;  %v952_v44 = vpop.permute.xlu0 %951  ;;  %v959_v7 = vpop.permute.xlu1 %958 }
 0x248   :  { %v728_v55 = vrot.slane %v727_v47, 2  ;;  %v735_v56 = vadd.f32 %v734_v48, %v733_v41  ;;  %v719_v57 = vunpack.c.l.bf16 %v710_v52  ;;  %v741_v63 = vadd.f32 %v740_v49, %v739_v42 }
 0x249   :  { %v723_v58 = vadd.f32 %v722_v50, %v721_v45  ;;  %v716_v59 = vunpack.c.l.bf16 %v707_v53  ;;  %v717_v60 = vunpack.c.l.bf16 %v708_v54  ;;  %v4005_v61 = vcombine.low %v707_v53, %v708_v54 }
 0x24a   :  { %v729_v62 = vadd.f32 %v728_v55, %v727_v47  ;;  %v756_v1 = vrot.slane %v718_v51, 4  ;;  %v762_v11 = vrot.slane %v719_v57, 4  ;;  %v736_v12 = vrot.slane %v735_v56, 1 }
 0x24b   :  { %v724_v2 = vrot.slane %v723_v58, 1  ;;  %v744_v3 = vrot.slane %v716_v59, 4  ;;  %v750_v4 = vrot.slane %v717_v60, 4  ;;  %4327 = vmatprep.mubr.bf16.mxu1 %v4005_v61  ;;  %v4006_v10 = vcombine.low %v709_v46, %v710_v52  ;;  %v966_v45 = vpop.permute.xlu0 %965  ;;  %v973_v48 = vpop.permute.xlu1 %972 }
 0x24c   :  { %v730_v8 = vrot.slane %v729_v62, 1  ;;  %v757_v13 = vadd.f32 %v756_v1, %v718_v51  ;;  %v763_v17 = vadd.f32 %v762_v11, %v719_v57  ;;  %v742_v21 = vrot.slane %v741_v63, 1 }
 0x24d   :  { %v725_v14 = vadd.f32 %v724_v2, %v723_v58  ;;  %v745_v15 = vadd.f32 %v744_v3, %v716_v59  ;;  %v751_v16 = vadd.f32 %v750_v4, %v717_v60  ;;  %4328 = vmatmul.mubr.bf16.gmra.mxu1 %v4006_v10  ;;  %v737_v27 = vadd.f32 %v736_v12, %v735_v56 }
 0x24e   :  { %v731_v18 = vadd.f32 %v730_v8, %v729_v62  ;;  %v758_v19 = vrot.slane %v757_v13, 2  ;;  %v764_v9 = vrot.slane %v763_v17, 2  ;;  %v743_v32 = vadd.f32 %v742_v21, %v741_v63 }
 0x24f   :  { %v746_v22 = vrot.slane %v745_v15, 2  ;;  %v752_v23 = vrot.slane %v751_v16, 2  ;;  %v980_v53 = vpop.permute.xlu0 %979  ;;  %v987_v62 = vpop.permute.xlu1 %986 }
 0x250   :  { %v759_v24 = vadd.f32 %v758_v19, %v757_v13  ;;  %v777_v25 = vsel %vm776_vm3, %v731_v18, %v725_v14  ;;  %v765_v20 = vadd.f32 %v764_v9, %v763_v17 }
 0x251   :  { %v747_v26 = vadd.f32 %v746_v22, %v745_v15  ;;  %v753_v5 = vadd.f32 %v752_v23, %v751_v16  ;;  %v779_v28 = vsel %vm778_vm4, %v737_v27, %v777_v25 }
 0x252   :  { %v760_v31 = vrot.slane %v759_v24, 1  ;;  %v766_v33 = vrot.slane %v765_v20, 1  ;;  %v781_v35 = vsel %vm780_vm5, %v743_v32, %v779_v28 }
 0x253   :  { %v748_v29 = vrot.slane %v747_v26, 1  ;;  %v754_v30 = vrot.slane %v753_v5, 1  ;;  %v994_v11 = vpop.permute.xlu0 %993  ;;  %v1001_v9 = vpop.permute.xlu1 %1000 }
 0x254   :  { %v761_v37 = vadd.f32 %v760_v31, %v759_v24  ;;  %v767_v40 = vadd.f32 %v766_v33, %v765_v20 }
 0x255   :  { %v749_v34 = vadd.f32 %v748_v29, %v747_v26  ;;  %v755_v6 = vadd.f32 %v754_v30, %v753_v5 }
 0x257   :  { %v783_v36 = vsel %vm782_vm6, %v749_v34, %v781_v35 }
 0x258   :  { %v785_v38 = vsel %vm784_vm7, %v755_v6, %v783_v36 }
 0x259   :  { %v787_v41 = vsel %vm786_vm8, %v761_v37, %v785_v38 }
 0x25a   :  { %v789_v42 = vsel %vm788_vm9, %v767_v40, %v787_v41 }
 0x25b   :  { %v791_v43 = vadd.f32 %v789_v42, %v711_v39 }
 0x25d   :  { %792 = vst [vmem:[#allocation2] sm:$0xff] %v791_v43 }
 0x305   :  { %v4325_v46 = vpop.f32.mrf.mxu1 }
 0x306   :  { %v1004_v47 = vmul.f32 %v4325_v46, %v966_v45 }
 0x307   :  { %v915_v49 = vpop.f32.mrf.mxu1 }
 0x308   :  { %v1025_v52 = vsel %vm1010_vm10, %v1004_v47, 0.0  ;;  %v1002_v50 = vmul.f32 %v952_v44, %v915_v49  ;;  %1080 = vperm.xlu1 %4851, %v1004_v47  }
 0x309   :  { %v1026_v54 = vrot.slane %v1025_v52, 4  ;;  %v4326_v51 = vpop.f32.mrf.mxu1 }
 0x30a   :  { %v1011_v55 = vsel %vm1010_vm10, %v1002_v50, 0.0  ;;  %v1005_v56 = vmul.f32 %v4326_v51, %v973_v48  ;;  %1070 = vperm.xlu0 %4852, %v1002_v50  }
 0x30b   :  { %v1027_v57 = vadd.f32 %v1026_v54, %v1025_v52  ;;  %v1012_v58 = vrot.slane %v1011_v55, 4  ;;  %v918_v59 = vpop.f32.mrf.mxu1 }
 0x30c   :  { %v1032_v60 = vsel %vm1010_vm10, %v1005_v56, 0.0  ;;  %v1003_v61 = vmul.f32 %v959_v7, %v918_v59 }
 0x30d   :  { %v1028_v63 = vrot.slane %v1027_v57, 2  ;;  %v1013_v1 = vadd.f32 %v1012_v58, %v1011_v55  ;;  %v1033_v2 = vrot.slane %v1032_v60, 4  ;;  %v4329_v4 = vpop.f32.mrf.mxu1 }
 0x30e   :  { %v1018_v3 = vsel %vm1010_vm10, %v1003_v61, 0.0  ;;  %1085 = vperm.xlu0 %4852, %v1005_v56   ;;  %1075 = vperm.xlu1 %4851, %v1003_v61   ;;  %v1008_v14 = vmul.f32 %v4329_v4, %v994_v11 }
 0x30f   :  { %v1014_v8 = vrot.slane %v1013_v1, 2  ;;  %v1034_v12 = vadd.f32 %v1033_v2, %v1032_v60  ;;  %v1019_v13 = vrot.slane %v1018_v3, 4  ;;  %v1029_v10 = vadd.f32 %v1028_v63, %v1027_v57  ;;  %v931_v15 = vpop.f32.mrf.mxu1  ;;  %v1067_v60 = vld [vmem:[%s6180_s5] sm:$0xff] }
 0x310   :  { %v1006_v18 = vmul.f32 %v980_v53, %v931_v15  ;;  %v1053_v22 = vsel %vm1010_vm10, %v1008_v14, 0.0 }
 0x311   :  { %v1035_v16 = vrot.slane %v1034_v12, 2  ;;  %v1020_v17 = vadd.f32 %v1019_v13, %v1018_v3  ;;  %v1015_v19 = vadd.f32 %v1014_v8, %v1013_v1  ;;  %v4330_v23 = vpop.f32.mrf.mxu1  ;;  %v1054_v25 = vrot.slane %v1053_v22, 4 }
 0x312   :  { %1100 = vperm.xlu1 %4851, %v1008_v14   ;;  %v1039_v26 = vsel %vm1010_vm10, %v1006_v18, 0.0  ;;  %v1009_v20 = vmul.f32 %v4330_v23, %v1001_v9  ;;  %v1030_v28 = vrot.slane %v1029_v10, 1 }
 0x313   :  { %v1036_v21 = vadd.f32 %v1035_v16, %v1034_v12  ;;  %v1021_v24 = vrot.slane %v1020_v17, 2  ;;  %v1040_v5 = vrot.slane %v1039_v26, 4  ;;  %v934_v27 = vpop.f32.mrf.mxu1  ;;  %v1055_v29 = vadd.f32 %v1054_v25, %v1053_v22 }
 0x314   :  { %v1007_v30 = vmul.f32 %v987_v62, %v934_v27  ;;  %v1060_v32 = vsel %vm1010_vm10, %v1009_v20, 0.0  ;;  %1105 = vperm.xlu0 %4852, %v1009_v20   ;;  %v1016_v33 = vrot.slane %v1015_v19, 1  ;;  %v1031_v40 = vadd.f32 %v1030_v28, %v1029_v10 }
 0x315   :  { %v1041_v31 = vadd.f32 %v1040_v5, %v1039_v26  ;;  %v1022_v34 = vadd.f32 %v1021_v24, %v1020_v17  ;;  %v1061_v6 = vrot.slane %v1060_v32, 4  ;;  %v1037_v36 = vrot.slane %v1036_v21, 1 }
 0x316   :  { %1090 = vperm.xlu1 %4851, %v1006_v18   ;;  %v1046_v35 = vsel %vm1010_vm10, %v1007_v30, 0.0  ;;  %v1056_v37 = vrot.slane %v1055_v29, 2  ;;  %v1017_v7 = vadd.f32 %v1016_v33, %v1015_v19 }
 0x317   :  { %v1042_v38 = vrot.slane %v1041_v31, 2  ;;  %v1047_v39 = vrot.slane %v1046_v35, 4  ;;  %v1062_v41 = vadd.f32 %v1061_v6, %v1060_v32  ;;  %v1038_v44 = vadd.f32 %v1037_v36, %v1036_v21 }
 0x318   :  { %1095 = vperm.xlu0 %4852, %v1007_v30   ;;  %v1023_v45 = vrot.slane %v1022_v34, 1  ;;  %v1057_v46 = vadd.f32 %v1056_v37, %v1055_v29 }
 0x319   :  { %v1043_v42 = vadd.f32 %v1042_v38, %v1041_v31  ;;  %v1048_v43 = vadd.f32 %v1047_v39, %v1046_v35  ;;  %v1063_v47 = vrot.slane %v1062_v41, 2 }
 0x31a   :  { %1184 = vperm.xlu1 %4851, %v1031_v40   ;;  %v1024_v50 = vadd.f32 %v1023_v45, %v1022_v34  ;;  %v1058_v55 = vrot.slane %v1057_v46, 1 }
 0x31b   :  { %v1049_v48 = vrot.slane %v1048_v43, 2  ;;  %v1044_v49 = vrot.slane %v1043_v42, 1  ;;  %v1064_v53 = vadd.f32 %v1063_v47, %v1062_v41 }
 0x31c   :  { %1188 = vperm.xlu0 %4852, %v1038_v44   ;;  %v1059_v57 = vadd.f32 %v1058_v55, %v1057_v46 }
 0x31d   :  { %v1050_v52 = vadd.f32 %v1049_v48, %v1048_v43  ;;  %v1045_v54 = vadd.f32 %v1044_v49, %v1043_v42  ;;  %v1065_v58 = vrot.slane %v1064_v53, 1 }
 0x31e   :  { %1176 = vperm.xlu1 %4851, %v1017_v7  }
 0x31f   :  { %v1051_v51 = vrot.slane %v1050_v52, 1  ;;  %v1066_v59 = vadd.f32 %v1065_v58, %v1064_v53 }
 0x320   :  { %1180 = vperm.xlu0 %4852, %v1024_v50  }
 0x321   :  { %v1052_v56 = vadd.f32 %v1051_v51, %v1050_v52 }
 0x322   :  { %1192 = vperm.xlu1 %4851, %v1045_v54  }
 0x324   :  { %1196 = vperm.xlu0 %4852, %v1052_v56  }
 0x326   :  { %1200 = vperm.xlu1 %4851, %v1059_v57  }
 0x328   :  { %1204 = vperm.xlu0 %4852, %v1066_v59  }
 0x383   :  { %v1081_v61 = vpop.permute.xlu1 %1080 }
 0x384   :  { %v1110_v62 = vmul.f32 %v1081_v61, %v1067_v60 }
 0x385   :  { %v1071_v63 = vpop.permute.xlu0 %1070 }
 0x386   :  { %v1131_v1 = vsel %vm72_vm0, %v1110_v62, 0.0  ;;  %v1108_v2 = vmul.f32 %v1071_v63, %v1067_v60 }
 0x387   :  { %v1132_v3 = vrot.slane %v1131_v1, 4 }
 0x388   :  { %v1117_v4 = vsel %vm72_vm0, %v1108_v2, 0.0 }
 0x389   :  { %v1118_v11 = vrot.slane %v1117_v4, 4  ;;  %v1076_v8 = vpop.permute.xlu1 %1075  ;;  %v1086_v12 = vpop.permute.xlu0 %1085  ;;  %v1133_v15 = vadd.f32 %v1132_v3, %v1131_v1 }
 0x38a   :  { %v1109_v13 = vmul.f32 %v1076_v8, %v1067_v60  ;;  %v1111_v10 = vmul.f32 %v1086_v12, %v1067_v60 }
 0x38b   :  { %v1119_v14 = vadd.f32 %v1118_v11, %v1117_v4  ;;  %v1134_v25 = vrot.slane %v1133_v15, 2 }
 0x38c   :  { %v1124_v16 = vsel %vm72_vm0, %v1109_v13, 0.0  ;;  %v1138_v17 = vsel %vm72_vm0, %v1111_v10, 0.0 }
 0x38d   :  { %v1120_v18 = vrot.slane %v1119_v14, 2  ;;  %v1125_v19 = vrot.slane %v1124_v16, 4  ;;  %v1139_v22 = vrot.slane %v1138_v17, 4  ;;  %v1101_v23 = vpop.permute.xlu1 %1100  ;;  %v1135_v34 = vadd.f32 %v1134_v25, %v1133_v15 }
 0x38e   :  { %v1114_v9 = vmul.f32 %v1101_v23, %v1067_v60 }
 0x38f   :  { %v1126_v21 = vadd.f32 %v1125_v19, %v1124_v16  ;;  %v1140_v24 = vadd.f32 %v1139_v22, %v1138_v17  ;;  %v1121_v5 = vadd.f32 %v1120_v18, %v1119_v14  ;;  %v1106_v27 = vpop.permute.xlu0 %1105  ;;  %v1136_v47 = vrot.slane %v1135_v34, 1 }
 0x390   :  { %v1159_v26 = vsel %vm72_vm0, %v1114_v9, 0.0  ;;  %v1115_v30 = vmul.f32 %v1106_v27, %v1067_v60 }
 0x391   :  { %v1127_v20 = vrot.slane %v1126_v21, 2  ;;  %v1091_v28 = vpop.permute.xlu1 %1090  ;;  %v1160_v29 = vrot.slane %v1159_v26, 4  ;;  %v1141_v33 = vrot.slane %v1140_v24, 2  ;;  %v1122_v37 = vrot.slane %v1121_v5, 1 }
 0x392   :  { %v1112_v31 = vmul.f32 %v1091_v28, %v1067_v60  ;;  %v1166_v35 = vsel %vm72_vm0, %v1115_v30, 0.0 }
 0x393   :  { %v1128_v32 = vadd.f32 %v1127_v20, %v1126_v21  ;;  %v1161_v6 = vadd.f32 %v1160_v29, %v1159_v26  ;;  %v1167_v39 = vrot.slane %v1166_v35, 4  ;;  %v1096_v41 = vpop.permute.xlu0 %1095  ;;  %v1142_v7 = vadd.f32 %v1141_v33, %v1140_v24  ;;  %v1173_v33 = vld [vmem:[#allocation3] sm:$0xff] }
 0x394   :  { %v1145_v36 = vsel %vm72_vm0, %v1112_v31, 0.0  ;;  %v1113_v43 = vmul.f32 %v1096_v41, %v1067_v60  ;;  %v1123_v52 = vadd.f32 %v1122_v37, %v1121_v5  ;;  %v1137_v60 = vadd.f32 %v1136_v47, %v1135_v34  ;;  %v4921_v31 = vld [vmem:[%s6214_s25] sm:$0xff] }
 0x395   :  { %v1129_v38 = vrot.slane %v1128_v32, 1  ;;  %v1146_v40 = vrot.slane %v1145_v36, 4  ;;  %v1185_v42 = vpop.permute.xlu1 %1184  ;;  %v1168_v45 = vadd.f32 %v1167_v39, %v1166_v35  ;;  %v1162_v48 = vrot.slane %v1161_v6, 2 }
 0x396   :  { %v1152_v49 = vsel %vm72_vm0, %v1113_v43, 0.0  ;;  %v1143_v56 = vrot.slane %v1142_v7, 1 }
 0x397   :  { %v1130_v44 = vadd.f32 %v1129_v38, %v1128_v32  ;;  %v1147_v46 = vadd.f32 %v1146_v40, %v1145_v36  ;;  %v1169_v50 = vrot.slane %v1168_v45, 2  ;;  %v1153_v54 = vrot.slane %v1152_v49, 4  ;;  %v1189_v51 = vpop.permute.xlu0 %1188 }
 0x398   :  { %v1163_v61 = vadd.f32 %v1162_v48, %v1161_v6  ;;  %v1144_v8 = vadd.f32 %v1143_v56, %v1142_v7 }
 0x399   :  { %v1148_v53 = vrot.slane %v1147_v46, 2  ;;  %v1177_v55 = vpop.permute.xlu1 %1176  ;;  %v1154_v58 = vadd.f32 %v1153_v54, %v1152_v49  ;;  %v1223_v59 = vsel %vm776_vm3, %v1130_v44, %v1123_v52  ;;  %v1170_v62 = vadd.f32 %v1169_v50, %v1168_v45 }
 0x39a   :  { %v1224_v4 = vsel %vm778_vm4, %v1137_v60, %v1223_v59  ;;  %v1164_v14 = vrot.slane %v1163_v61, 1 }
 0x39b   :  { %v1149_v57 = vadd.f32 %v1148_v53, %v1147_v46  ;;  %v1155_v1 = vrot.slane %v1154_v58, 2  ;;  %v1181_v2 = vpop.permute.xlu0 %1180  ;;  %v1171_v16 = vrot.slane %v1170_v62, 1  ;;  %v1225_v19 = vsel %vm780_vm5, %v1144_v8, %v1224_v4 }
 0x39c   :  { %v1206_v11 = vsel %vm776_vm3, %v1181_v2, %v1177_v55  ;;  %v1165_v26 = vadd.f32 %v1164_v14, %v1163_v61 }
 0x39d   :  { %v1150_v63 = vrot.slane %v1149_v57, 1  ;;  %v1193_v3 = vpop.permute.xlu1 %1192  ;;  %v1156_v13 = vadd.f32 %v1155_v1, %v1154_v58  ;;  %v1207_v10 = vsel %vm778_vm4, %v1185_v42, %v1206_v11  ;;  %v1172_v5 = vadd.f32 %v1171_v16, %v1170_v62 }
 0x39e   :  { %v1208_v15 = vsel %vm780_vm5, %v1189_v51, %v1207_v10 }
 0x39f   :  { %v1151_v12 = vadd.f32 %v1150_v63, %v1149_v57  ;;  %v1157_v17 = vrot.slane %v1156_v13, 1  ;;  %v1209_v18 = vsel %vm782_vm6, %v1193_v3, %v1208_v15  ;;  %v1197_v22 = vpop.permute.xlu0 %1196 }
 0x3a0   :  { %v1210_v21 = vsel %vm784_vm7, %v1197_v22, %v1209_v18 }
 0x3a1   :  { %v1201_v23 = vpop.permute.xlu1 %1200  ;;  %v1226_v9 = vsel %vm782_vm6, %v1151_v12, %v1225_v19  ;;  %v1158_v24 = vadd.f32 %v1157_v17, %v1156_v13 }
 0x3a2   :  { %v1211_v25 = vsel %vm786_vm8, %v1201_v23, %v1210_v21 }
 0x3a3   :  { %v1227_v20 = vsel %vm784_vm7, %v1158_v24, %v1226_v9  ;;  %v1205_v27 = vpop.permute.xlu0 %1204 }
 0x3a4   :  { %v1228_v28 = vsel %vm786_vm8, %v1165_v26, %v1227_v20  ;;  %v1212_v29 = vsel %vm788_vm9, %v1205_v27, %v1211_v25 }
 0x3a5   :  { %v1229_v30 = vsel %vm788_vm9, %v1172_v5, %v1228_v28  ;;  %v1214_v32 = vmul.f32 %v4921_v31, %v1212_v29 }
 0x3a7   :  { %v1231_v34 = vsub.f32 %v1214_v32, %v1229_v30 }
 0x3a9   :  { %v1232_v6 = vadd.f32 %v1231_v34, %v1173_v33 }
 0x3ab   :  { %1233 = vst.msk [vmem:[#allocation3] sm:$0xff] %vm72_vm0, %v1232_v6 }
 0x3ac PF:  { %4331 = vmatprep.subr.mxu0 %v4948_v0  ;;  %v1255_v35 = vld [vmem:[%s6188_s13 + $0x78] sm:$0xff]  ;;  %v1254_v36 = vld [vmem:[%s6188_s13 + $0x70] sm:$0xff]  ;;  %v1253_v37 = vld [vmem:[%s6188_s13 + $0x68] sm:$0xff]  ;;  %4366 = vmatprep.subr.mxu1 %v4948_v0  ;;  %vm4953_vm11 = vmmov 0   ;;  %s6217_s28 = sld [smem:[#allocation12_spill]]  ;;  %vm1897_vm12 = vcmask 31744  }
 0x3ad   :  { %v5265_v38 = vand.u32 4294901760, %v1255_v35  ;;  %v5267_v39 = vand.u32 4294901760, %v1254_v36  ;;  %v5269_v40 = vand.u32 4294901760, %v1253_v37  ;;  %v1252_v41 = vld [vmem:[%s6188_s13 + $0x60] sm:$0xff]  ;;  %v1251_v42 = vld [vmem:[%s6188_s13 + $0x58] sm:$0xff]  ;;  %v1250_v43 = vld [vmem:[%s6188_s13 + $0x50] sm:$0xff]  ;;  %4363 = vmatprep.mubr.msk.f32.mxu0 %vm4953_vm11, %v4948_v0  ;;  %4398 = vmatprep.mubr.msk.f32.mxu1 %vm4953_vm11, %v4948_v0 }
 0x3ae   :  { %v5284_v44 = vand.u32 4294901760, %v1252_v41  ;;  %v5286_v7 = vand.u32 4294901760, %v1251_v42  ;;  %v5288_v45 = vand.u32 4294901760, %v1250_v43  ;;  %v1249_v46 = vld [vmem:[%s6188_s13 + $0x48] sm:$0xff]  ;;  %v1248_v47 = vld [vmem:[%s6188_s13 + $0x40] sm:$0xff]  ;;  %v1247_v53 = vld [vmem:[%s6188_s13 + $0x38] sm:$0xff] }
 0x3af   :  { %4332 = vmatpush3.msra.mxu0 %v5265_v38  ;;  %v5298_v48 = vsub.f32 %v1255_v35, %v5265_v38  ;;  %v5301_v49 = vsub.f32 %v1254_v36, %v5267_v39  ;;  %v5303_v52 = vand.u32 4294901760, %v1249_v46  ;;  %v5306_v50 = vsub.f32 %v1253_v37, %v5269_v40  ;;  %v1246_v59 = vld [vmem:[%s6188_s13 + $0x30] sm:$0xff]  ;;  %v1245_v8 = vld [vmem:[%s6188_s13 + $0x28] sm:$0xff]  ;;  %v1244_v15 = vld [vmem:[%s6188_s13 + $0x20] sm:$0xff] }
 0x3b0   :  { %4333 = vmatprep.subr.mxu0 %v4948_v0  ;;  %v5313_v54 = vsub.f32 %v1252_v41, %v5284_v44  ;;  %v5316_v51 = vsub.f32 %v1251_v42, %v5286_v7  ;;  %v5322_v58 = vand.u32 4294901760, %v1248_v47  ;;  %v5329_v61 = vand.u32 4294901760, %v1247_v53  ;;  %v1243_v21 = vld [vmem:[%s6188_s13 + $0x18] sm:$0xff]  ;;  %v1239_v24 = vld [vmem:[#allocation2] sm:$0xff]  ;;  %v1242_v20 = vld [vmem:[%s6188_s13 + $0x10] sm:$0xff] }
 0x3b1   :  { %4334 = vmatpush3.msra.mxu0 %v5267_v39  ;;  %v1350_v55 = vand.u32 4294901760, %v5298_v48  ;;  %v1357_v56 = vand.u32 4294901760, %v5301_v49  ;;  %v1364_v57 = vand.u32 4294901760, %v5306_v50  ;;  %v5333_v63 = vsub.f32 %v1250_v43, %v5288_v45  ;;  %v1241_v32 = vld [vmem:[%s6188_s13 + $0x8] sm:$0xff]  ;;  %v1240_v41 = vld [vmem:[%s6188_s13] sm:$0xff] }
 0x3b2   :  { %4335 = vmatprep.subr.mxu0 %v4948_v0  ;;  %v1371_v60 = vand.u32 4294901760, %v5313_v54  ;;  %v1378_v62 = vand.u32 4294901760, %v5316_v51  ;;  %v5346_v4 = vsub.f32 %v1249_v46, %v5303_v52  ;;  %v5349_v11 = vand.u32 4294901760, %v1246_v59 }
 0x3b3   :  { %4336 = vmatpush3.msra.mxu0 %v5269_v40  ;;  %v1351_v1 = vsub.f32 %v5298_v48, %v1350_v55  ;;  %v1358_v2 = vsub.f32 %v5301_v49, %v1357_v56  ;;  %v1365_v3 = vsub.f32 %v5306_v50, %v1364_v57  ;;  %v1385_v14 = vand.u32 4294901760, %v5333_v63 }
 0x3b4   :  { %4337 = vmatprep.subr.mxu0 %v4948_v0  ;;  %v1372_v10 = vsub.f32 %v5313_v54, %v1371_v60  ;;  %v1379_v16 = vsub.f32 %v5316_v51, %v1378_v62  ;;  %v5367_v17 = vsub.f32 %v1248_v47, %v5322_v58  ;;  %v5370_v19 = vand.u32 4294901760, %v1245_v8 }
 0x3b5   :  { %4338 = vmatpush3.msra.mxu0 %v5284_v44  ;;  %v1352_v12 = vand.u32 4294901760, %v1351_v1  ;;  %v1359_v13 = vand.u32 4294901760, %v1358_v2  ;;  %v1366_v18 = vand.u32 4294901760, %v1365_v3  ;;  %v1392_v22 = vand.u32 4294901760, %v5346_v4 }
 0x3b6   :  { %4339 = vmatprep.subr.mxu0 %v4948_v0  ;;  %v5374_v23 = vsub.f32 %v1247_v53, %v5329_v61  ;;  %v5378_v9 = vand.u32 4294901760, %v1244_v15  ;;  %v1373_v25 = vand.u32 4294901760, %v1372_v10  ;;  %v1386_v26 = vsub.f32 %v5333_v63, %v1385_v14 }
 0x3b7   :  { %4340 = vmatpush3.msra.mxu0 %v5286_v7  ;;  %4367 = vmatpush3.msra.mxu1 %v1352_v12  ;;  %v1399_v5 = vand.u32 4294901760, %v5367_v17  ;;  %v5392_v27 = vsub.f32 %v1246_v59, %v5349_v11  ;;  %v1380_v28 = vand.u32 4294901760, %v1379_v16  ;;  %v1393_v30 = vsub.f32 %v5346_v4, %v1392_v22 }
 0x3b8   :  { %4341 = vmatprep.subr.mxu0 %v4948_v0  ;;  %4368 = vmatprep.subr.mxu1 %v4948_v0  ;;  %v1406_v29 = vand.u32 4294901760, %v5374_v23  ;;  %v5401_v31 = vand.u32 4294901760, %v1243_v21  ;;  %v5407_v33 = vsub.f32 %v1245_v8, %v5370_v19  ;;  %v5409_v34 = vand.u32 4294901760, %v1239_v24 }
 0x3b9   :  { %4342 = vmatpush3.msra.mxu0 %v5288_v45  ;;  %4369 = vmatpush3.msra.mxu1 %v1359_v13  ;;  %v5413_v6 = vand.u32 4294901760, %v1242_v20  ;;  %v1387_v35 = vand.u32 4294901760, %v1386_v26  ;;  %v1400_v36 = vsub.f32 %v5367_v17, %v1399_v5  ;;  %v1413_v37 = vand.u32 4294901760, %v5392_v27 }
 0x3ba   :  { %4343 = vmatprep.subr.mxu0 %v4948_v0  ;;  %4370 = vmatprep.subr.mxu1 %v4948_v0  ;;  %v5424_v42 = vsub.f32 %v1244_v15, %v5378_v9  ;;  %v1407_v43 = vsub.f32 %v5374_v23, %v1406_v29  ;;  %v5431_v46 = vand.u32 4294901760, %v1241_v32  ;;  %v1394_v47 = vand.u32 4294901760, %v1393_v30 }
 0x3bb   :  { %4344 = vmatpush3.msra.mxu0 %v5303_v52  ;;  %4371 = vmatpush3.msra.mxu1 %v1366_v18  ;;  %v1420_v53 = vand.u32 4294901760, %v5407_v33  ;;  %v5436_v59 = vsub.f32 %v1239_v24, %v5409_v34  ;;  %v5439_v1 = vsub.f32 %v1243_v21, %v5401_v31  ;;  %v5443_v2 = vand.u32 4294901760, %v1240_v41 }
 0x3bc   :  { %4345 = vmatprep.subr.mxu0 %v4948_v0  ;;  %4372 = vmatprep.subr.mxu1 %v4948_v0  ;;  %v1401_v3 = vand.u32 4294901760, %v1400_v36  ;;  %v1414_v8 = vsub.f32 %v5392_v27, %v1413_v37  ;;  %v1427_v12 = vand.u32 4294901760, %v5424_v42  ;;  %v5451_v13 = vsub.f32 %v1242_v20, %v5413_v6 }
 0x3bd   :  { %4346 = vmatpush3.msra.mxu0 %v5322_v58  ;;  %4373 = vmatpush3.msra.mxu1 %v1373_v25  ;;  %v1408_v10 = vand.u32 4294901760, %v1407_v43  ;;  %v1421_v15 = vsub.f32 %v5407_v33, %v1420_v53  ;;  %v1339_v16 = vand.u32 4294901760, %v5436_v59  ;;  %v1434_v18 = vand.u32 4294901760, %v5439_v1 }
 0x3be   :  { %4347 = vmatprep.subr.mxu0 %v4948_v0  ;;  %4374 = vmatprep.subr.mxu1 %v4948_v0  ;;  %v5462_v21 = vsub.f32 %v1241_v32, %v5431_v46  ;;  %v1415_v24 = vand.u32 4294901760, %v1414_v8  ;;  %v1428_v25 = vsub.f32 %v5424_v42, %v1427_v12  ;;  %v1441_v26 = vand.u32 4294901760, %v5451_v13 }
 0x3bf   :  { %4348 = vmatpush3.msra.mxu0 %v5329_v61  ;;  %4375 = vmatpush3.msra.mxu1 %v1380_v28  ;;  %v5472_v20 = vsub.f32 %v1240_v41, %v5443_v2  ;;  %v1422_v28 = vand.u32 4294901760, %v1421_v15  ;;  %v1340_v30 = vsub.f32 %v5436_v59, %v1339_v16  ;;  %v1435_v32 = vsub.f32 %v5439_v1, %v1434_v18 }
 0x3c0   :  { %4349 = vmatprep.subr.mxu0 %v4948_v0  ;;  %4376 = vmatprep.subr.mxu1 %v4948_v0  ;;  %v1429_v36 = vand.u32 4294901760, %v1428_v25  ;;  %v1442_v41 = vsub.f32 %v5451_v13, %v1441_v26  ;;  %vm1901_vm13 = vcmask 1043456   ;;  %vm3498_vm14 = vcmask 1042432  }
 0x3c1   :  { %4350 = vmatpush3.msra.mxu0 %v5349_v11  ;;  %4377 = vmatpush3.msra.mxu1 %v1387_v35  ;;  %v1448_v35 = vand.u32 4294901760, %v5462_v21  ;;  %v1455_v43 = vand.u32 4294901760, %v5472_v20 }
 0x3c2   :  { %4351 = vmatprep.subr.mxu0 %v4948_v0  ;;  %4378 = vmatprep.subr.mxu1 %v4948_v0 }
 0x3c3   :  { %4352 = vmatpush3.msra.mxu0 %v5370_v19  ;;  %4379 = vmatpush3.msra.mxu1 %v1394_v47  ;;  %v1341_v47 = vand.u32 4294901760, %v1340_v30  ;;  %v1449_v8 = vsub.f32 %v5462_v21, %v1448_v35  ;;  %v1456_v15 = vsub.f32 %v5472_v20, %v1455_v43 }
 0x3c4   :  { %4353 = vmatprep.subr.mxu0 %v4948_v0  ;;  %4380 = vmatprep.subr.mxu1 %v4948_v0 }
 0x3c5   :  { %4354 = vmatpush3.msra.mxu0 %v5378_v9  ;;  %4381 = vmatpush3.msra.mxu1 %v1401_v3  ;;  %v1436_v3 = vand.u32 4294901760, %v1435_v32  ;;  %v1457_v25 = vand.u32 4294901760, %v1456_v15 }
 0x3c6   :  { %4355 = vmatprep.subr.mxu0 %v4948_v0  ;;  %4382 = vmatprep.subr.mxu1 %v4948_v0 }
 0x3c7   :  { %4356 = vmatpush3.msra.mxu0 %v5401_v31  ;;  %4383 = vmatpush3.msra.mxu1 %v1408_v10  ;;  %v1443_v10 = vand.u32 4294901760, %v1442_v41 }
 0x3c8   :  { %4357 = vmatprep.subr.mxu0 %v4948_v0  ;;  %4384 = vmatprep.subr.mxu1 %v4948_v0 }
 0x3c9   :  { %4358 = vmatpush3.msra.mxu0 %v5413_v6  ;;  %4385 = vmatpush3.msra.mxu1 %v1415_v24  ;;  %v1450_v24 = vand.u32 4294901760, %v1449_v8  ;;  %v2372_v8 = vld [vmem:[%s6190_s15 + $0x30] sm:$0xff] }
 0x3ca   :  { %4359 = vmatprep.subr.mxu0 %v4948_v0  ;;  %4386 = vmatprep.subr.mxu1 %v4948_v0 }
 0x3cb   :  { %4360 = vmatpush3.msra.mxu0 %v5431_v46  ;;  %4387 = vmatpush3.msra.mxu1 %v1422_v28 }
 0x3cc   :  { %4361 = vmatprep.subr.mxu0 %v4948_v0  ;;  %4388 = vmatprep.subr.mxu1 %v4948_v0 }
 0x3cd   :  { %4362 = vmatpush3.msra.mxu0 %v5443_v2  ;;  %4389 = vmatpush3.msra.mxu1 %v1429_v36 }
 0x3ce   :  { %4390 = vmatprep.subr.mxu1 %v4948_v0  ;;  %4401 = vmatprep.subr.mxu0 %v4948_v0 }
 0x3cf   :  { %4364 = vmatmul.mubr.f32.vlgmr.msra.gmra.mxu0 %v1341_v47  ;;  %4391 = vmatpush3.msra.mxu1 %v1436_v3 }
 0x3d0   :  { %4402 = vmatpush3.msra.mxu0 %v5298_v48  ;;  %4392 = vmatprep.subr.mxu1 %v4948_v0  ;;  %v5604_v48 = vld [vmem:[%s6217_s28] sm:$0xff] }
 0x3d1   :  { %4403 = vmatprep.subr.mxu0 %v4948_v0  ;;  %4393 = vmatpush3.msra.mxu1 %v1443_v10 }
 0x3d2   :  { %4404 = vmatpush3.msra.mxu0 %v5301_v49  ;;  %4394 = vmatprep.subr.mxu1 %v4948_v0 }
 0x3d3   :  { %4405 = vmatprep.subr.mxu0 %v4948_v0  ;;  %4395 = vmatpush3.msra.mxu1 %v1450_v24 }
 0x3d4   :  { %4406 = vmatpush3.msra.mxu0 %v5306_v50  ;;  %4396 = vmatprep.subr.mxu1 %v4948_v0 }
 0x3d5   :  { %4407 = vmatprep.subr.mxu0 %v4948_v0  ;;  %4397 = vmatpush3.msra.mxu1 %v1457_v25 }
 0x3d6   :  { %4408 = vmatpush3.msra.mxu0 %v5313_v54  ;;  %4399 = vmatmul.mubr.f32.vlgmr.msra.gmra.mxu1 %v5409_v34 }
 0x3d7   :  { %4409 = vmatprep.subr.mxu0 %v4948_v0  ;;  %4436 = vmatprep.subr.mxu1 %v4948_v0 }
 0x3d8   :  { %4410 = vmatpush3.msra.mxu0 %v5316_v51  ;;  %4437 = vmatpush3.msra.mxu1 %v5265_v38 }
 0x3d9   :  { %4411 = vmatprep.subr.mxu0 %v4948_v0  ;;  %4438 = vmatprep.subr.mxu1 %v4948_v0 }
 0x3da   :  { %4412 = vmatpush3.msra.mxu0 %v5333_v63  ;;  %4439 = vmatpush3.msra.mxu1 %v5267_v39  ;;  %v2379_v63 = vld [vmem:[%s6190_s15 + $0x68] sm:$0xff] }
 0x3db   :  { %4413 = vmatprep.subr.mxu0 %v4948_v0  ;;  %4440 = vmatprep.subr.mxu1 %v4948_v0 }
 0x3dc   :  { %4414 = vmatpush3.msra.mxu0 %v5346_v4  ;;  %4441 = vmatpush3.msra.mxu1 %v5269_v40 }
 0x3dd   :  { %4415 = vmatprep.subr.mxu0 %v4948_v0  ;;  %4442 = vmatprep.subr.mxu1 %v4948_v0 }
 0x3de   :  { %4416 = vmatpush3.msra.mxu0 %v5367_v17  ;;  %4443 = vmatpush3.msra.mxu1 %v5284_v44  ;;  %v2378_v17 = vld [vmem:[%s6190_s15 + $0x60] sm:$0xff] }
 0x3df   :  { %4417 = vmatprep.subr.mxu0 %v4948_v0  ;;  %4444 = vmatprep.subr.mxu1 %v4948_v0 }
 0x3e0   :  { %4418 = vmatpush3.msra.mxu0 %v5374_v23  ;;  %4445 = vmatpush3.msra.mxu1 %v5286_v7 }
 0x3e1   :  { %4419 = vmatprep.subr.mxu0 %v4948_v0  ;;  %4446 = vmatprep.subr.mxu1 %v4948_v0 }
 0x3e2   :  { %4420 = vmatpush3.msra.mxu0 %v5392_v27  ;;  %4447 = vmatpush3.msra.mxu1 %v5288_v45 }
 0x3e3   :  { %4421 = vmatprep.subr.mxu0 %v4948_v0  ;;  %4448 = vmatprep.subr.mxu1 %v4948_v0 }
 0x3e4   :  { %4422 = vmatpush3.msra.mxu0 %v5407_v33  ;;  %4449 = vmatpush3.msra.mxu1 %v5303_v52 }
 0x3e5   :  { %4423 = vmatprep.subr.mxu0 %v4948_v0  ;;  %4450 = vmatprep.subr.mxu1 %v4948_v0 }
 0x3e6   :  { %4424 = vmatpush3.msra.mxu0 %v5424_v42  ;;  %4451 = vmatpush3.msra.mxu1 %v5322_v58 }
 0x3e7   :  { %4425 = vmatprep.subr.mxu0 %v4948_v0  ;;  %4452 = vmatprep.subr.mxu1 %v4948_v0 }
 0x3e8   :  { %4426 = vmatpush3.msra.mxu0 %v5439_v1  ;;  %4453 = vmatpush3.msra.mxu1 %v5329_v61  ;;  %v2375_v1 = vld [vmem:[%s6190_s15 + $0x48] sm:$0xff] }
 0x3e9   :  { %4427 = vmatprep.subr.mxu0 %v4948_v0  ;;  %4454 = vmatprep.subr.mxu1 %v4948_v0 }
 0x3ea   :  { %4428 = vmatpush3.msra.mxu0 %v5451_v13  ;;  %4455 = vmatpush3.msra.mxu1 %v5349_v11 }
 0x3eb   :  { %4429 = vmatprep.subr.mxu0 %v4948_v0  ;;  %4456 = vmatprep.subr.mxu1 %v4948_v0 }
 0x3ec   :  { %4430 = vmatpush3.msra.mxu0 %v5462_v21  ;;  %4457 = vmatpush3.msra.mxu1 %v5370_v19  ;;  %v2374_v21 = vld [vmem:[%s6190_s15 + $0x40] sm:$0xff] }
 0x3ed   :  { %4431 = vmatprep.subr.mxu0 %v4948_v0  ;;  %4458 = vmatprep.subr.mxu1 %v4948_v0  ;;  %v5801_v30 = vand.u32 4294901760, %v2374_v21 }
 0x3ee   :  { %4432 = vmatpush3.msra.mxu0 %v5472_v20  ;;  %4433 = vmatprep.mubr.msk.f32.mxu0 %vm4953_vm11, %v4948_v0 }
 0x3ef   :  { %4459 = vmatpush3.msra.mxu1 %v5378_v9  ;;  %4434 = vmatmul.mubr.f32.vlgmr.msra.gmra.mxu0 %v5436_v59 }
 0x3f0   :  { %4460 = vmatprep.subr.mxu1 %v4948_v0  ;;  %4471 = vmatprep.subr.mxu0 %v4948_v0 }
 0x3f1   :  { %4461 = vmatpush3.msra.mxu1 %v5401_v31  ;;  %4472 = vmatpush3.msra.mxu0 %v1350_v55 }
 0x3f2   :  { %4462 = vmatprep.subr.mxu1 %v4948_v0  ;;  %4473 = vmatprep.subr.mxu0 %v4948_v0 }
 0x3f3   :  { %4463 = vmatpush3.msra.mxu1 %v5413_v6  ;;  %4474 = vmatpush3.msra.mxu0 %v1357_v56 }
 0x3f4   :  { %4464 = vmatprep.subr.mxu1 %v4948_v0  ;;  %4475 = vmatprep.subr.mxu0 %v4948_v0 }
 0x3f5   :  { %4465 = vmatpush3.msra.mxu1 %v5431_v46  ;;  %4476 = vmatpush3.msra.mxu0 %v1364_v57  ;;  %v2381_v57 = vld [vmem:[%s6190_s15 + $0x78] sm:$0xff] }
 0x3f6   :  { %4466 = vmatprep.subr.mxu1 %v4948_v0  ;;  %4477 = vmatprep.subr.mxu0 %v4948_v0 }
 0x3f7   :  { %4467 = vmatpush3.msra.mxu1 %v5443_v2  ;;  %4468 = vmatprep.mubr.msk.f32.mxu1 %vm4953_vm11, %v4948_v0 }
 0x3f8   :  { %4478 = vmatpush3.msra.mxu0 %v1371_v60  ;;  %4469 = vmatmul.mubr.f32.vlgmr.msra.gmra.mxu1 %v1339_v16  ;;  %v2380_v60 = vld [vmem:[%s6190_s15 + $0x70] sm:$0xff]  ;;  %v5788_v16 = vand.u32 4294901760, %v2375_v1 }
 0x3f9   :  { %4479 = vmatprep.subr.mxu0 %v4948_v0  ;;  %4506 = vmatprep.subr.mxu1 %v4948_v0 }
 0x3fa   :  { %4480 = vmatpush3.msra.mxu0 %v1378_v62  ;;  %4507 = vmatpush3.msra.mxu1 %v5265_v38  ;;  %v1899_v38 = vsel %vm1897_vm12, %v5604_v48, 0  ;;  %v5722_v62 = vand.u32 4294901760, %v2380_v60  ;;  %v5799_v28 = vsub.f32 %v2375_v1, %v5788_v16 }
 0x3fb   :  { %4481 = vmatprep.subr.mxu0 %v4948_v0  ;;  %4508 = vmatprep.subr.mxu1 %v4948_v0 }
 0x3fc   :  { %4482 = vmatpush3.msra.mxu0 %v1385_v14  ;;  %4509 = vmatpush3.msra.mxu1 %v5267_v39  ;;  %v1238_v39 = vld [vmem:[%s6187_s12] sm:$0xf]  ;;  %v5733_v14 = vand.u32 4294901760, %v2379_v63  ;;  %v6206_v41 = vand.u32 4294901760, %v5799_v28 }
 0x3fd   :  { %4483 = vmatprep.subr.mxu0 %v4948_v0  ;;  %4510 = vmatprep.subr.mxu1 %v4948_v0 }
 0x3fe   :  { %4484 = vmatpush3.msra.mxu0 %v1392_v22  ;;  %4511 = vmatpush3.msra.mxu1 %v5269_v40  ;;  %v5626_v40 = vand.u32 4294901760, %v1899_v38  ;;  %v5745_v23 = vsub.f32 %v2379_v63, %v5733_v14  ;;  %v2519_v15 = vsub.f32 %v5799_v28, %v6206_v41 }
 0x3ff   :  { %4485 = vmatprep.subr.mxu0 %v4948_v0  ;;  %4512 = vmatprep.subr.mxu1 %v4948_v0 }
 0x400   :  { %4486 = vmatpush3.msra.mxu0 %v1399_v5  ;;  %4513 = vmatpush3.msra.mxu1 %v5284_v44  ;;  %v1903_v44 = vsel %vm1901_vm13, %v1238_v39, 0  ;;  %v2377_v5 = vld [vmem:[%s6190_s15 + $0x58] sm:$0xff]  ;;  %v2371_v39 = vld [vmem:[%s6190_s15 + $0x28] sm:$0xff] }
 0x401   :  { %4487 = vmatprep.subr.mxu0 %v4948_v0  ;;  %4514 = vmatprep.subr.mxu1 %v4948_v0  ;;  %v1936_v49 = vand.u32 4294901760, %v1903_v44 }
 0x402   :  { %4488 = vmatpush3.msra.mxu0 %v1406_v29  ;;  %4515 = vmatpush3.msra.mxu1 %v5286_v7  ;;  %v5640_v7 = vsub.f32 %v1899_v38, %v5626_v40  ;;  %v5835_v38 = vand.u32 4294901760, %v2372_v8 }
 0x403   :  { %4489 = vmatprep.subr.mxu0 %v4948_v0  ;;  %4516 = vmatprep.subr.mxu1 %v4948_v0 }
 0x404   :  { %4490 = vmatpush3.msra.mxu0 %v1413_v37  ;;  %4517 = vmatpush3.msra.mxu1 %v5288_v45  ;;  %v1973_v45 = vand.u32 4294901760, %v5640_v7 }
 0x405   :  { %4491 = vmatprep.subr.mxu0 %v4948_v0  ;;  %4518 = vmatprep.subr.mxu1 %v4948_v0 }
 0x406   :  { %4492 = vmatpush3.msra.mxu0 %v1420_v53  ;;  %4519 = vmatpush3.msra.mxu1 %v5303_v52  ;;  %v2013_v52 = vsub.f32 %v1903_v44, %v1936_v49  ;;  %v1974_v50 = vsub.f32 %v5640_v7, %v1973_v45 }
 0x407   :  { %4493 = vmatprep.subr.mxu0 %v4948_v0  ;;  %4520 = vmatprep.subr.mxu1 %v4948_v0 }
 0x408   :  { %4494 = vmatpush3.msra.mxu0 %v1427_v12  ;;  %4521 = vmatpush3.msra.mxu1 %v5322_v58  ;;  %v2014_v54 = vand.u32 4294901760, %v2013_v52  ;;  %v1975_v51 = vand.u32 4294901760, %v1974_v50  ;;  %v5714_v58 = vand.u32 4294901760, %v2381_v57 }
 0x409   :  { %4495 = vmatprep.subr.mxu0 %v4948_v0  ;;  %4522 = vmatprep.subr.mxu1 %v4948_v0 }
 0x40a   :  { %4496 = vmatpush3.msra.mxu0 %v1434_v18  ;;  %4523 = vmatpush3.msra.mxu1 %v5329_v61  ;;  %v2015_v55 = vsub.f32 %v2013_v52, %v2014_v54  ;;  %v5720_v61 = vsub.f32 %v2381_v57, %v5714_v58  ;;  %v2369_v57 = vld [vmem:[%s6190_s15 + $0x18] sm:$0xff] }
 0x40b   :  { %4497 = vmatprep.subr.mxu0 %v4948_v0  ;;  %4524 = vmatprep.subr.mxu1 %v4948_v0 }
 0x40c   :  { %4498 = vmatpush3.msra.mxu0 %v1441_v26  ;;  %4525 = vmatpush3.msra.mxu1 %v5349_v11  ;;  %v2016_v56 = vand.u32 4294901760, %v2015_v55  ;;  %v2476_v4 = vand.u32 4294901760, %v5720_v61  ;;  %v5731_v11 = vsub.f32 %v2380_v60, %v5722_v62 }
 0x40d   :  { %4499 = vmatprep.subr.mxu0 %v4948_v0  ;;  %4526 = vmatprep.subr.mxu1 %v4948_v0 }
 0x40e   :  { %4500 = vmatpush3.msra.mxu0 %v1448_v35  ;;  %4527 = vmatpush3.msra.mxu1 %v5370_v19  ;;  %v2477_v19 = vsub.f32 %v5720_v61, %v2476_v4  ;;  %v2483_v22 = vand.u32 4294901760, %v5731_v11  ;;  %v2373_v35 = vld [vmem:[%s6190_s15 + $0x38] sm:$0xff] }
 0x40f   :  { %4501 = vmatprep.subr.mxu0 %v4948_v0  ;;  %4528 = vmatprep.subr.mxu1 %v4948_v0  ;;  %v5819_v47 = vand.u32 4294901760, %v2373_v35 }
 0x410   :  { %4502 = vmatpush3.msra.mxu0 %v1455_v43  ;;  %4503 = vmatprep.mubr.msk.f32.mxu0 %vm4953_vm11, %v4948_v0  ;;  %v2478_v27 = vand.u32 4294901760, %v2477_v19  ;;  %v2484_v29 = vsub.f32 %v5731_v11, %v2483_v22  ;;  %v5817_v43 = vsub.f32 %v2374_v21, %v5801_v30  ;;  %v5876_v19 = vand.u32 4294901760, %v2369_v57 }
 0x411   :  { %4529 = vmatpush3.msra.mxu1 %v5378_v9  ;;  %4504 = vmatmul.mubr.f32.vlgmr.msra.gmra.mxu0 %v5409_v34  ;;  %v5747_v9 = vand.u32 4294901760, %v2378_v17  ;;  %v5832_v25 = vsub.f32 %v2373_v35, %v5819_v47 }
 0x412   :  { %4530 = vmatprep.subr.mxu1 %v4948_v0  ;;  %4541 = vmatprep.subr.mxu0 %v4948_v0  ;;  %v2485_v37 = vand.u32 4294901760, %v2484_v29  ;;  %v6205_v24 = vand.u32 4294901760, %v5817_v43 }
 0x413   :  { %4531 = vmatpush3.msra.mxu1 %v5401_v31  ;;  %4538 = vmatprep.mubr.msk.f32.mxu1 %vm4953_vm11, %v4948_v0  ;;  %v2490_v31 = vand.u32 4294901760, %v5745_v23  ;;  %v5759_v33 = vsub.f32 %v2378_v17, %v5747_v9 }
 0x414   :  { %4532 = vmatprep.subr.mxu1 %v4948_v0  ;;  %4542 = vmatpush3.msra.mxu0 %v1936_v49  ;;  %v2526_v44 = vsub.f32 %v5817_v43, %v6205_v24 }
 0x415   :  { %4533 = vmatpush3.msra.mxu1 %v5413_v6  ;;  %4543 = vmatprep.mubr.msk.f32.mxu0 %vm4953_vm11, %v4948_v0  ;;  %v2376_v6 = vld [vmem:[%s6190_s15 + $0x50] sm:$0xff]  ;;  %v2491_v42 = vsub.f32 %v5745_v23, %v2490_v31 }
 0x416   :  { %4534 = vmatprep.subr.mxu1 %v4948_v0  ;;  %4544 = vmatmul.mubr.f32.vlgmr.msra.gmra.mxu0 %v1975_v51  ;;  %v5772_v53 = vand.u32 4294901760, %v2376_v6  ;;  %v2527_v50 = vand.u32 4294901760, %v2526_v44 }
 0x417   :  { %4535 = vmatpush3.msra.mxu1 %v5431_v46  ;;  %4551 = vmatprep.subr.mxu0 %v4948_v0  ;;  %v2497_v46 = vand.u32 4294901760, %v5759_v33 }
 0x418   :  { %4536 = vmatprep.subr.mxu1 %v4948_v0  ;;  %4552 = vmatpush3.msra.mxu0 %v2013_v52  ;;  %v5786_v13 = vsub.f32 %v2376_v6, %v5772_v53  ;;  %v2370_v52 = vld [vmem:[%s6190_s15 + $0x20] sm:$0xff] }
 0x419   :  { %4537 = vmatpush3.msra.mxu1 %v5443_v2  ;;  %4553 = vmatprep.mubr.msk.f32.mxu0 %vm4953_vm11, %v4948_v0  ;;  %v2492_v2 = vand.u32 4294901760, %v2491_v42  ;;  %v2498_v12 = vsub.f32 %v5759_v33, %v2497_v46  ;;  %v5863_v55 = vand.u32 4294901760, %v2370_v52 }
 0x41a   :  { %4539 = vmatmul.mubr.f32.vlgmr.msra.gmra.mxu1 %v5409_v34  ;;  %4546 = vmatprep.subr.mxu1 %v4948_v0  ;;  %v5762_v34 = vand.u32 4294901760, %v2377_v5  ;;  %v6207_v20 = vand.u32 4294901760, %v5786_v13 }
 0x41b   :  { %4547 = vmatpush3.msra.mxu1 %v2016_v56  ;;  %4548 = vmatprep.mubr.msk.f32.mxu1 %vm4953_vm11, %v4948_v0  ;;  %v2499_v26 = vand.u32 4294901760, %v2498_v12  ;;  %v5874_v17 = vsub.f32 %v2370_v52, %v5863_v55 }
 0x41c   :  { %4556 = vmatprep.subr.mxu1 %v4948_v0  ;;  %4554 = vmatmul.mubr.f32.vlgmr.msra.gmra.mxu0 %v5640_v7  ;;  %v5776_v59 = vsub.f32 %v2377_v5, %v5762_v34  ;;  %v2512_v36 = vsub.f32 %v5786_v13, %v6207_v20  ;;  %v6204_v7 = vand.u32 4294901760, %v5832_v25 }
 0x41d   :  { %4561 = vmatprep.subr.mxu0 %v4948_v0  ;;  %4563 = vmatprep.mubr.msk.f32.mxu0 %vm4953_vm11, %v4948_v0  ;;  %v6201_v6 = vand.u32 4294901760, %v5874_v17 }
 0x41e   :  { %4549 = vmatmul.mubr.f32.vlgmr.msra.gmra.mxu1 %v5626_v40  ;;  %4562 = vmatpush3.msra.mxu0 %v2014_v54  ;;  %v2504_v18 = vand.u32 4294901760, %v5776_v59  ;;  %v2513_v10 = vand.u32 4294901760, %v2512_v36  ;;  %v2533_v54 = vsub.f32 %v5832_v25, %v6204_v7  ;;  %v2366_v36 = vld [vmem:[%s6190_s15] sm:$0xff] }
 0x41f   :  { %4557 = vmatpush3.msra.mxu1 %v1936_v49  ;;  %4558 = vmatprep.mubr.msk.f32.mxu1 %vm4953_vm11, %v4948_v0  ;;  %v2554_v21 = vsub.f32 %v5874_v17, %v6201_v6 }
 0x420   :  { %4566 = vmatprep.subr.mxu1 %v4948_v0  ;;  %4564 = vmatmul.mubr.f32.vlgmr.msra.gmra.mxu0 %v5626_v40  ;;  %v2505_v32 = vsub.f32 %v5776_v59, %v2504_v18  ;;  %v2534_v60 = vand.u32 4294901760, %v2533_v54 }
 0x421   :  { %4571 = vmatprep.subr.mxu0 %v4948_v0  ;;  %4603 = vmatprep.mubr.msk.f32.mxu0 %vm4953_vm11, %v4948_v0 }
 0x422   :  { %4559 = vmatmul.mubr.f32.vlgmr.msra.gmra.mxu1 %v1973_v45  ;;  %4572 = vmatpush3.msra.mxu0 %v5714_v58  ;;  %v2506_v3 = vand.u32 4294901760, %v2505_v32  ;;  %v5850_v45 = vsub.f32 %v2372_v8, %v5835_v38 }
 0x423   :  { %4567 = vmatpush3.msra.mxu1 %v1936_v49  ;;  %4568 = vmatprep.mubr.msk.f32.mxu1 %vm4953_vm11, %v4948_v0  ;;  %v5846_v49 = vand.u32 4294901760, %v2371_v39 }
 0x424   :  { %4606 = vmatprep.subr.mxu1 %v4948_v0  ;;  %4573 = vmatprep.subr.mxu0 %v4948_v0  ;;  %v6203_v56 = vand.u32 4294901760, %v5850_v45 }
 0x425   :  { %4574 = vmatpush3.msra.mxu0 %v5722_v62  ;;  %v5861_v51 = vsub.f32 %v2371_v39, %v5846_v49 }
 0x426   :  { %4569 = vmatmul.mubr.f32.vlgmr.msra.gmra.mxu1 %v5626_v40  ;;  %4575 = vmatprep.subr.mxu0 %v4948_v0  ;;  %v2520_v40 = vand.u32 4294901760, %v2519_v15  ;;  %v2540_v5 = vsub.f32 %v5850_v45, %v6203_v56  ;;  %v5921_v15 = vand.u32 4294901760, %v2366_v36 }
 0x427   :  { %4638 = vmatprep.mubr.msk.f32.mxu1 %vm4953_vm11, %v4948_v0  ;;  %4576 = vmatpush3.msra.mxu0 %v5733_v14  ;;  %v6202_v63 = vand.u32 4294901760, %v5861_v51 }
 0x428   :  { %4577 = vmatprep.subr.mxu0 %v4948_v0  ;;  %4607 = vmatpush3.msra.mxu1 %v2478_v27  ;;  %v2368_v27 = vld [vmem:[%s6190_s15 + $0x10] sm:$0xff]  ;;  %v2541_v1 = vand.u32 4294901760, %v2540_v5  ;;  %v5933_v52 = vsub.f32 %v2366_v36, %v5921_v15 }
 0x429   :  { %4578 = vmatpush3.msra.mxu0 %v5747_v9  ;;  %4608 = vmatprep.subr.mxu1 %v4948_v0  ;;  %v2547_v29 = vsub.f32 %v5861_v51, %v6202_v63  ;;  %v5894_v42 = vand.u32 4294901760, %v2368_v27 }
 0x42a   :  { %4579 = vmatprep.subr.mxu0 %v4948_v0  ;;  %4609 = vmatpush3.msra.mxu1 %v2485_v37  ;;  %v5892_v37 = vsub.f32 %v2369_v57, %v5876_v19  ;;  %v6197_v57 = vand.u32 4294901760, %v5933_v52 }
 0x42b   :  { %4580 = vmatpush3.msra.mxu0 %v5762_v34  ;;  %4610 = vmatprep.subr.mxu1 %v4948_v0  ;;  %v2548_v12 = vand.u32 4294901760, %v2547_v29  ;;  %v5907_v32 = vsub.f32 %v2368_v27, %v5894_v42 }
 0x42c   :  { %4581 = vmatprep.subr.mxu0 %v4948_v0  ;;  %4611 = vmatpush3.msra.mxu1 %v2492_v2  ;;  %v2367_v2 = vld [vmem:[%s6190_s15 + $0x8] sm:$0xff]  ;;  %v2582_v5 = vsub.f32 %v5933_v52, %v6197_v57 }
 0x42d   :  { %4582 = vmatpush3.msra.mxu0 %v5772_v53  ;;  %4612 = vmatprep.subr.mxu1 %v4948_v0  ;;  %v5910_v35 = vand.u32 4294901760, %v2367_v2 }
 0x42e   :  { %4583 = vmatprep.subr.mxu0 %v4948_v0  ;;  %4613 = vmatpush3.msra.mxu1 %v2499_v26  ;;  %v6200_v26 = vand.u32 4294901760, %v5892_v37  ;;  %v2583_v29 = vand.u32 4294901760, %v2582_v5 }
 0x42f   :  { %4584 = vmatpush3.msra.mxu0 %v5788_v16  ;;  %4614 = vmatprep.subr.mxu1 %v4948_v0  ;;  %v5925_v39 = vsub.f32 %v2367_v2, %v5910_v35 }
 0x430   :  { %4585 = vmatprep.subr.mxu0 %v4948_v0  ;;  %4615 = vmatpush3.msra.mxu1 %v2506_v3  ;;  %v2555_v3 = vand.u32 4294901760, %v2554_v21  ;;  %v2561_v8 = vsub.f32 %v5892_v37, %v6200_v26 }
 0x431   :  { %4586 = vmatpush3.msra.mxu0 %v5801_v30  ;;  %4616 = vmatprep.subr.mxu1 %v4948_v0 }
 0x432   :  { %4587 = vmatprep.subr.mxu0 %v4948_v0  ;;  %4617 = vmatpush3.msra.mxu1 %v2513_v10  ;;  %v6199_v10 = vand.u32 4294901760, %v5907_v32 }
 0x433   :  { %4588 = vmatpush3.msra.mxu0 %v5819_v47  ;;  %4618 = vmatprep.subr.mxu1 %v4948_v0 }
 0x434   :  { %4589 = vmatprep.subr.mxu0 %v4948_v0  ;;  %4619 = vmatpush3.msra.mxu1 %v2520_v40  ;;  %v2562_v40 = vand.u32 4294901760, %v2561_v8  ;;  %v2568_v44 = vsub.f32 %v5907_v32, %v6199_v10 }
 0x435   :  { %4590 = vmatpush3.msra.mxu0 %v5835_v38  ;;  %4620 = vmatprep.subr.mxu1 %v4948_v0 }
 0x436   :  { %4591 = vmatprep.subr.mxu0 %v4948_v0  ;;  %4621 = vmatpush3.msra.mxu1 %v2527_v50  ;;  %v6198_v50 = vand.u32 4294901760, %v5925_v39  ;;  %v2569_v54 = vand.u32 4294901760, %v2568_v44 }
 0x437   :  { %4592 = vmatpush3.msra.mxu0 %v5846_v49  ;;  %4622 = vmatprep.subr.mxu1 %v4948_v0 }
 0x438   :  { %4593 = vmatprep.subr.mxu0 %v4948_v0  ;;  %4623 = vmatpush3.msra.mxu1 %v2534_v60  ;;  %v2575_v60 = vsub.f32 %v5925_v39, %v6198_v50 }
 0x439   :  { %4594 = vmatpush3.msra.mxu0 %v5863_v55  ;;  %4624 = vmatprep.subr.mxu1 %v4948_v0 }
 0x43a   :  { %4595 = vmatprep.subr.mxu0 %v4948_v0  ;;  %4625 = vmatpush3.msra.mxu1 %v2541_v1  ;;  %v2576_v27 = vand.u32 4294901760, %v2575_v60 }
 0x43b   :  { %4596 = vmatpush3.msra.mxu0 %v5876_v19  ;;  %4626 = vmatprep.subr.mxu1 %v4948_v0 }
 0x43c   :  { %4597 = vmatprep.subr.mxu0 %v4948_v0  ;;  %4627 = vmatpush3.msra.mxu1 %v2548_v12 }
 0x43d   :  { %4598 = vmatpush3.msra.mxu0 %v5894_v42  ;;  %4628 = vmatprep.subr.mxu1 %v4948_v0 }
 0x43e   :  { %4599 = vmatprep.subr.mxu0 %v4948_v0  ;;  %4629 = vmatpush3.msra.mxu1 %v2555_v3 }
 0x43f   :  { %4600 = vmatpush3.msra.mxu0 %v5910_v35  ;;  %4630 = vmatprep.subr.mxu1 %v4948_v0 }
 0x440   :  { %4601 = vmatprep.subr.mxu0 %v4948_v0  ;;  %4631 = vmatpush3.msra.mxu1 %v2562_v40 }
 0x441   :  { %4602 = vmatpush3.msra.mxu0 %v5921_v15  ;;  %4632 = vmatprep.subr.mxu1 %v4948_v0 }
 0x442   :  { %4641 = vmatprep.subr.mxu0 %v4948_v0  ;;  %4633 = vmatpush3.msra.mxu1 %v2569_v54 }
 0x443   :  { %4634 = vmatprep.subr.mxu1 %v4948_v0 }
 0x444   :  { %4635 = vmatpush3.msra.mxu1 %v2576_v27 }
 0x445   :  { %4636 = vmatprep.subr.mxu1 %v4948_v0 }
 0x446   :  { %4637 = vmatpush3.msra.mxu1 %v2583_v29 }
 0x447   :  { %4676 = vmatprep.subr.mxu1 %v4948_v0 }
 0x48f   :  { %v1343_v1 = vpop.f32.mrf.mxu0 }
 0x491   :  { %v4365_v2 = vpop.f32.mrf.mxu0 }
 0x496   :  { %v1494_v12 = vpop.f32.mrf.mxu1 }
 0x497   :  { %v1495_v54 = vadd.f32 %v1494_v12, %v1343_v1 }
 0x498   :  { %v4400_v21 = vpop.f32.mrf.mxu1 }
 0x4af   :  { %v1598_v36 = vpop.f32.mrf.mxu0 }
 0x4b0   :  { %v1599_v57 = vadd.f32 %v1598_v36, %v1495_v54 }
 0x4b1   :  { %v4435_v3 = vpop.f32.mrf.mxu0 }
 0x4b8   :  { %v1687_v8 = vpop.f32.mrf.mxu1 }
 0x4b9   :  { %v1688_v5 = vadd.f32 %v1687_v8, %v1599_v57  ;;  %v4015_v57 = vld [vmem:[%s6189_s14] ss:$0 sm:$0xff] }
 0x4ba   :  { %v4470_v40 = vpop.f32.mrf.mxu1 }
 0x4d1   :  { %v1806_v44 = vpop.f32.mrf.mxu0 }
 0x4d2   :  { %v1807_v10 = vadd.f32 %v1806_v44, %v1688_v5 }
 0x4d3   :  { %v4505_v60 = vpop.f32.mrf.mxu0 }
 0x4d6   :  { %v1977_v50 = vpop.f32.mrf.mxu0 }
 0x4d8   :  { %v4545_v27 = vpop.f32.mrf.mxu0 }
 0x4d9   :  { %v4017_v27 = vld [vmem:[%s6191_s16] ss:$0 sm:$0xff] }
 0x4da   :  { %v1893_v26 = vpop.f32.mrf.mxu1 }
 0x4db   :  { %v1894_v29 = vadd.f32 %v1893_v26, %v1807_v10 }
 0x4dc   :  { %v4540_v6 = vpop.f32.mrf.mxu1  ;;  %v2127_v63 = vpop.f32.mrf.mxu0 }
 0x4dd   :  { %v1978_v56 = vadd.f32 %v1977_v50, %v1894_v29 }
 0x4de   :  { %v2053_v2 = vpop.f32.mrf.mxu1  ;;  %v4555_v7 = vpop.f32.mrf.mxu0 }
 0x4df   :  { %v2054_v21 = vadd.f32 %v2053_v2, %v1978_v56 }
 0x4e0   :  { %v4550_v24 = vpop.f32.mrf.mxu1  ;;  %v2275_v3 = vpop.f32.mrf.mxu0 }
 0x4e1   :  { %v2128_v41 = vadd.f32 %v2127_v63, %v2054_v21  ;;  %v3492_v21 = vld [vmem:[#allocation3] sm:$0xff] }
 0x4e2   :  { %v2201_v40 = vpop.f32.mrf.mxu1  ;;  %v4565_v20 = vpop.f32.mrf.mxu0 }
 0x4e3   :  { %v2202_v1 = vadd.f32 %v2201_v40, %v2128_v41 }
 0x4e4   :  { %v4560_v12 = vpop.f32.mrf.mxu1 }
 0x4e5   :  { %v2276_v36 = vadd.f32 %v2275_v3, %v2202_v1  ;;  %v3496_v1 = vsel %vm72_vm0, %v3492_v21, 0 }
 0x4e6   :  { %v2347_v54 = vpop.f32.mrf.mxu1 }
 0x4e7   :  { %v2348_v26 = vadd.f32 %v2347_v54, %v2276_v36 }
 0x4e8   :  { %v4570_v6 = vpop.f32.mrf.mxu1 }
 0x4e9   :  { %v2358_v10 = vadd.f32 %v4015_v57, %v2348_v26  ;;  %v3568_v57 = vand.u32 4294901760, %v3496_v1 }
 0x4eb   :  { %v4016_v50 = vmul.f32 -1.442695, %v2358_v10 }
 0x4ed   :  { %4922 = vpow2.f32 %v4016_v50 }
 0x4fa   :  { %v4923_v7 = vpop.eup %4922 }
 0x4fb   :  { %v2362_v56 = vadd.f32 1.0, %v4923_v7 }
 0x4fd   :  { %4924 = vrcp.f32 %v2362_v56 }
 0x50a   :  { %v4925_v24 = vpop.eup %4924 }
 0x50b   :  { %v2365_v63 = vmul.f32 %v4925_v24, %v2358_v10  ;;  %v3569_v10 = vsub.f32 %v3496_v1, %v3568_v57 }
 0x50d   :  { %v5954_v8 = vand.u32 4294901760, %v2365_v63  ;;  %v3570_v56 = vand.u32 4294901760, %v3569_v10 }
 0x50f   :  { %v5957_v20 = vsub.f32 %v2365_v63, %v5954_v8  ;;  %4639 = vmatmul.mubr.f32.vlgmr.msra.gmra.mxu1 %v5954_v8  ;;  %v3571_v24 = vsub.f32 %v3569_v10, %v3570_v56 }
 0x510   :  { %4677 = vmatpush3.msra.mxu1 %v5714_v58  ;;  %4708 = vmatprep.mubr.msk.f32.mxu1 %vm4953_vm11, %v4948_v0 }
 0x511   :  { %4678 = vmatprep.subr.mxu1 %v4948_v0  ;;  %v2465_v41 = vand.u32 4294901760, %v5957_v20  ;;  %v3572_v63 = vand.u32 4294901760, %v3571_v24 }
 0x512   :  { %4679 = vmatpush3.msra.mxu1 %v5722_v62 }
 0x513   :  { %4680 = vmatprep.subr.mxu1 %v4948_v0  ;;  %v2466_v44 = vsub.f32 %v5957_v20, %v2465_v41 }
 0x514   :  { %4681 = vmatpush3.msra.mxu1 %v5733_v14 }
 0x515   :  { %4682 = vmatprep.subr.mxu1 %v4948_v0  ;;  %v2467_v60 = vand.u32 4294901760, %v2466_v44 }
 0x516   :  { %4683 = vmatpush3.msra.mxu1 %v5747_v9 }
 0x517   :  { %4684 = vmatprep.subr.mxu1 %v4948_v0  ;;  %4604 = vmatmul.mubr.f32.vlgmr.msra.gmra.mxu0 %v2467_v60  ;;  %v4018_v60 = vld [vmem:[%s6193_s18] ss:$0 sm:$0xff]  ;;  %s4954_s18 = smov [#allocation6]  }
 0x518   :  { %4642 = vmatpush3.msra.mxu0 %v5720_v61  ;;  %4685 = vmatpush3.msra.mxu1 %v5762_v34  ;;  %v6219_v61 = vand.u32 4294901760, %v5799_v28  ;;  %s3956_s2 = sshll.u32 %s4954_s18, 4  ;;  %s3957_s2 = int_to_ptr.vmem [resolvable:$true] %s3956_s2 }
 0x519   :  { %4643 = vmatprep.subr.mxu0 %v4948_v0  ;;  %4686 = vmatprep.subr.mxu1 %v4948_v0  ;;  %s4926_s3 = scalar_lea.vmem %s3957_s2, 128  ;;  %p4931_p2 = scmp.lt.s32.totalorder %s3957_s2, %s3957_s2 }
 0x51a   :  { %4644 = vmatpush3.msra.mxu0 %v5731_v11  ;;  %4687 = vmatpush3.msra.mxu1 %v5772_v53  ;;  %v6222_v11 = vand.u32 4294901760, %v5850_v45  ;;  %p4927_p1 = scmp.ne.s32.totalorder %s3957_s2, %s4926_s3  ;;  %p4932_p3 = scmp.lt.s32.totalorder %s4926_s3, %s4926_s3 }
 0x51b   :  { %4645 = vmatprep.subr.mxu0 %v4948_v0  ;;  %4688 = vmatprep.subr.mxu1 %v4948_v0 }
 0x51c   :  { %4646 = vmatpush3.msra.mxu0 %v5745_v23  ;;  %4689 = vmatpush3.msra.mxu1 %v5788_v16  ;;  %v3032_v23 = vld [vmem:[%s6192_s17] sm:$0xf]  ;;  %p4933_p4 = por %p4932_p3, %p4931_p2 }
 0x51d   :  { %4647 = vmatprep.subr.mxu0 %v4948_v0  ;;  %4690 = vmatprep.subr.mxu1 %v4948_v0 }
 0x51e   :  { %4648 = vmatpush3.msra.mxu0 %v5759_v33  ;;  %4691 = vmatpush3.msra.mxu1 %v5801_v30  ;;  %v3044_v33 = vsel %vm1901_vm13, %v3032_v23, 0  ;;  %p4934_p5 = pnand %p4933_p4, %p4927_p1 }
 0x51f   :  { %4649 = vmatprep.subr.mxu0 %v4948_v0  ;;  %4692 = vmatprep.subr.mxu1 %v4948_v0 }
 0x520   :  { %4650 = vmatpush3.msra.mxu0 %v5776_v59  ;;  %4693 = vmatpush3.msra.mxu1 %v5819_v47 }
 0x521   :  { %4651 = vmatprep.subr.mxu0 %v4948_v0  ;;  %4694 = vmatprep.subr.mxu1 %v4948_v0 }
 0x522   :  { %4652 = vmatpush3.msra.mxu0 %v5786_v13  ;;  %4695 = vmatpush3.msra.mxu1 %v5835_v38 }
 0x523   :  { %4653 = vmatprep.subr.mxu0 %v4948_v0  ;;  %4696 = vmatprep.subr.mxu1 %v4948_v0 }
 0x524   :  { %4654 = vmatpush3.msra.mxu0 %v5799_v28  ;;  %4697 = vmatpush3.msra.mxu1 %v5846_v49 }
 0x525   :  { %4655 = vmatprep.subr.mxu0 %v4948_v0  ;;  %4698 = vmatprep.subr.mxu1 %v4948_v0 }
 0x526   :  { %4656 = vmatpush3.msra.mxu0 %v5817_v43  ;;  %4699 = vmatpush3.msra.mxu1 %v5863_v55 }
 0x527   :  { %4657 = vmatprep.subr.mxu0 %v4948_v0  ;;  %4700 = vmatprep.subr.mxu1 %v4948_v0 }
 0x528   :  { %4658 = vmatpush3.msra.mxu0 %v5832_v25  ;;  %4701 = vmatpush3.msra.mxu1 %v5876_v19 }
 0x529   :  { %4659 = vmatprep.subr.mxu0 %v4948_v0  ;;  %4702 = vmatprep.subr.mxu1 %v4948_v0 }
 0x52a   :  { %4660 = vmatpush3.msra.mxu0 %v5850_v45  ;;  %4703 = vmatpush3.msra.mxu1 %v5894_v42 }
 0x52b   :  { %4661 = vmatprep.subr.mxu0 %v4948_v0  ;;  %4704 = vmatprep.subr.mxu1 %v4948_v0 }
 0x52c   :  { %4662 = vmatpush3.msra.mxu0 %v5861_v51  ;;  %4705 = vmatpush3.msra.mxu1 %v5910_v35 }
 0x52d   :  { %4663 = vmatprep.subr.mxu0 %v4948_v0  ;;  %4706 = vmatprep.subr.mxu1 %v4948_v0 }
 0x52e   :  { %4664 = vmatpush3.msra.mxu0 %v5874_v17  ;;  %4707 = vmatpush3.msra.mxu1 %v5921_v15 }
 0x52f   :  { %4665 = vmatprep.subr.mxu0 %v4948_v0  ;;  %4709 = vmatmul.mubr.f32.vlgmr.msra.gmra.mxu1 %v2465_v41 }
 0x530   :  { %4746 = vmatprep.subr.mxu1 %v4948_v0  ;;  %4666 = vmatpush3.msra.mxu0 %v5892_v37 }
 0x531   :  { %4747 = vmatpush3.msra.mxu1 %v5714_v58  ;;  %4667 = vmatprep.subr.mxu0 %v4948_v0  ;;  %v6218_v58 = vand.u32 4294901760, %v5786_v13 }
 0x532   :  { %4748 = vmatprep.subr.mxu1 %v4948_v0  ;;  %4668 = vmatpush3.msra.mxu0 %v5907_v32 }
 0x533   :  { %4749 = vmatpush3.msra.mxu1 %v5722_v62  ;;  %4669 = vmatprep.subr.mxu0 %v4948_v0  ;;  %v6220_v62 = vand.u32 4294901760, %v5817_v43 }
 0x534   :  { %4750 = vmatprep.subr.mxu1 %v4948_v0  ;;  %4670 = vmatpush3.msra.mxu0 %v5925_v39 }
 0x535   :  { %4751 = vmatpush3.msra.mxu1 %v5733_v14  ;;  %4671 = vmatprep.subr.mxu0 %v4948_v0  ;;  %v6223_v14 = vand.u32 4294901760, %v5861_v51 }
 0x536   :  { %4752 = vmatprep.subr.mxu1 %v4948_v0  ;;  %4672 = vmatpush3.msra.mxu0 %v5933_v52 }
 0x537   :  { %4673 = vmatprep.mubr.msk.f32.mxu0 %vm4953_vm11, %v4948_v0  ;;  %4753 = vmatpush3.msra.mxu1 %v5747_v9  ;;  %v6225_v9 = vand.u32 4294901760, %v5892_v37  ;;  %v3493_v37 = vld [vmem:[%s6194_s19] sm:$0x7] }
 0x538   :  { %4674 = vmatmul.mubr.f32.vlgmr.msra.gmra.mxu0 %v5957_v20  ;;  %4711 = vmatprep.subr.mxu0 %v4948_v0 }
 0x539   :  { %4754 = vmatprep.subr.mxu1 %v4948_v0  ;;  %4712 = vmatpush3.msra.mxu0 %v2476_v4  ;;  %v6221_v4 = vand.u32 4294901760, %v5832_v25 }
 0x53a   :  { %4755 = vmatpush3.msra.mxu1 %v5762_v34  ;;  %4713 = vmatprep.subr.mxu0 %v4948_v0  ;;  %v6227_v34 = vand.u32 4294901760, %v5925_v39 }
 0x53b   :  { %4756 = vmatprep.subr.mxu1 %v4948_v0  ;;  %4714 = vmatpush3.msra.mxu0 %v2483_v22  ;;  %v6224_v22 = vand.u32 4294901760, %v5874_v17 }
 0x53c   :  { %4757 = vmatpush3.msra.mxu1 %v5772_v53  ;;  %4715 = vmatprep.subr.mxu0 %v4948_v0  ;;  %v6228_v53 = vand.u32 4294901760, %v5933_v52 }
 0x53d   :  { %4758 = vmatprep.subr.mxu1 %v4948_v0  ;;  %4716 = vmatpush3.msra.mxu0 %v2490_v31  ;;  %v6226_v31 = vand.u32 4294901760, %v5907_v32  ;;  %v3500_v32 = vsel %vm3498_vm14, %v3493_v37, 0 }
 0x53e   :  { %4759 = vmatpush3.msra.mxu1 %v5788_v16  ;;  %4717 = vmatprep.subr.mxu0 %v4948_v0  ;;  %v3533_v52 = vand.u32 4294901760, %v3500_v32 }
 0x53f   :  { %4760 = vmatprep.subr.mxu1 %v4948_v0  ;;  %4718 = vmatpush3.msra.mxu0 %v2497_v46  ;;  %v3077_v46 = vand.u32 4294901760, %v3044_v33 }
 0x540   :  { %4761 = vmatpush3.msra.mxu1 %v5801_v30  ;;  %4719 = vmatprep.subr.mxu0 %v4948_v0  ;;  %v3610_v2 = vsub.f32 %v3500_v32, %v3533_v52 }
 0x541   :  { %4762 = vmatprep.subr.mxu1 %v4948_v0  ;;  %4720 = vmatpush3.msra.mxu0 %v2504_v18  ;;  %v6126_v59 = vsub.f32 %v3044_v33, %v3077_v46 }
 0x542   :  { %4763 = vmatpush3.msra.mxu1 %v5819_v47  ;;  %4721 = vmatprep.subr.mxu0 %v4948_v0  ;;  %v3611_v36 = vand.u32 4294901760, %v3610_v2 }
 0x543   :  { %4764 = vmatprep.subr.mxu1 %v4948_v0  ;;  %4722 = vmatpush3.msra.mxu0 %v6218_v58  ;;  %v3155_v13 = vand.u32 4294901760, %v6126_v59 }
 0x544   :  { %4765 = vmatpush3.msra.mxu1 %v5835_v38  ;;  %4723 = vmatprep.subr.mxu0 %v4948_v0 }
 0x545   :  { %4766 = vmatprep.subr.mxu1 %v4948_v0  ;;  %4724 = vmatpush3.msra.mxu0 %v6219_v61  ;;  %v3156_v16 = vsub.f32 %v6126_v59, %v3155_v13 }
 0x546   :  { %4767 = vmatpush3.msra.mxu1 %v5846_v49  ;;  %4725 = vmatprep.subr.mxu0 %v4948_v0 }
 0x547   :  { %4768 = vmatprep.subr.mxu1 %v4948_v0  ;;  %4726 = vmatpush3.msra.mxu0 %v6220_v62  ;;  %v3157_v18 = vand.u32 4294901760, %v3156_v16 }
 0x548   :  { %4769 = vmatpush3.msra.mxu1 %v5863_v55  ;;  %4727 = vmatprep.subr.mxu0 %v4948_v0 }
 0x549   :  { %4770 = vmatprep.subr.mxu1 %v4948_v0  ;;  %4728 = vmatpush3.msra.mxu0 %v6221_v4 }
 0x54a   :  { %4771 = vmatpush3.msra.mxu1 %v5876_v19  ;;  %4729 = vmatprep.subr.mxu0 %v4948_v0 }
 0x54b   :  { %4772 = vmatprep.subr.mxu1 %v4948_v0  ;;  %4730 = vmatpush3.msra.mxu0 %v6222_v11 }
 0x54c   :  { %4773 = vmatpush3.msra.mxu1 %v5894_v42  ;;  %4731 = vmatprep.subr.mxu0 %v4948_v0 }
 0x54d   :  { %4774 = vmatprep.subr.mxu1 %v4948_v0  ;;  %4732 = vmatpush3.msra.mxu0 %v6223_v14 }
 0x54e   :  { %4775 = vmatpush3.msra.mxu1 %v5910_v35  ;;  %4733 = vmatprep.subr.mxu0 %v4948_v0 }
 0x54f   :  { %4776 = vmatprep.subr.mxu1 %v4948_v0  ;;  %4734 = vmatpush3.msra.mxu0 %v6224_v22 }
 0x550   :  { %4777 = vmatpush3.msra.mxu1 %v5921_v15  ;;  %4778 = vmatprep.mubr.msk.f32.mxu1 %vm4953_vm11, %v4948_v0 }
 0x551   :  { %4735 = vmatprep.subr.mxu0 %v4948_v0  ;;  %4779 = vmatmul.mubr.f32.vlgmr.msra.gmra.mxu1 %v5954_v8 }
 0x552   :  { %4736 = vmatpush3.msra.mxu0 %v6225_v9  ;;  %4743 = vmatprep.mubr.msk.f32.mxu0 %vm4953_vm11, %v4948_v0 }
 0x553   :  { %4737 = vmatprep.subr.mxu0 %v4948_v0  ;;  %4786 = vmatprep.subr.mxu1 %v4948_v0 }
 0x554   :  { %4738 = vmatpush3.msra.mxu0 %v6226_v31  ;;  %4788 = vmatprep.mubr.msk.f32.mxu1 %vm4953_vm11, %v4948_v0 }
 0x555   :  { %4739 = vmatprep.subr.mxu0 %v4948_v0  ;;  %4787 = vmatpush3.msra.mxu1 %v3157_v18 }
 0x556   :  { %4740 = vmatpush3.msra.mxu0 %v6227_v34  ;;  %4796 = vmatprep.subr.mxu1 %v4948_v0 }
 0x557   :  { %4741 = vmatprep.subr.mxu0 %v4948_v0 }
 0x558   :  { %4742 = vmatpush3.msra.mxu0 %v6228_v53 }
 0x559   :  { %4744 = vmatmul.mubr.f32.vlgmr.msra.gmra.mxu0 %v5954_v8  ;;  %4781 = vmatprep.subr.mxu0 %v4948_v0 }
 0x55a   :  { %4782 = vmatpush3.msra.mxu0 %v3077_v46  ;;  %4783 = vmatprep.mubr.msk.f32.mxu0 %vm4953_vm11, %v4948_v0 }
 0x55b   :  { %4791 = vmatprep.subr.mxu0 %v4948_v0 }
 0x5cf   :  { %v2620_v28 = vpop.f32.mrf.mxu1 }
 0x5d1   :  { %v4640_v30 = vpop.f32.mrf.mxu1 }
 0x5d7   :  { %v2469_v43 = vpop.f32.mrf.mxu0 }
 0x5d8   :  { %v2621_v55 = vadd.f32 %v2620_v28, %v2469_v43 }
 0x5d9   :  { %v4605_v47 = vpop.f32.mrf.mxu0 }
 0x5ef   :  { %v2813_v25 = vpop.f32.mrf.mxu1 }
 0x5f1   :  { %v4710_v38 = vpop.f32.mrf.mxu1 }
 0x5f8   :  { %v2724_v49 = vpop.f32.mrf.mxu0 }
 0x5f9   :  { %v2725_v19 = vadd.f32 %v2724_v49, %v2621_v55 }
 0x5fa   :  { %v4675_v45 = vpop.f32.mrf.mxu0 }
 0x5fb   :  { %v2814_v42 = vadd.f32 %v2813_v25, %v2725_v19 }
 0x611   :  { %v3019_v51 = vpop.f32.mrf.mxu1 }
 0x613   :  { %v4780_v17 = vpop.f32.mrf.mxu1 }
 0x619   :  { %v2932_v35 = vpop.f32.mrf.mxu0 }
 0x61a   :  { %v2933_v15 = vadd.f32 %v2932_v35, %v2814_v42 }
 0x61b   :  { %v4745_v39 = vpop.f32.mrf.mxu0 }
 0x61c   :  { %v3020_v5 = vadd.f32 %v3019_v51, %v2933_v15 }
 0x61e   :  { %v3023_v29 = vadd.f32 %v3020_v5, %v5604_v48  ;;  %v3612_v48 = vsub.f32 %v3610_v2, %v3611_v36 }
 0x620   :  { %v3031_v3 = vadd.f32 %v4017_v27, %v3023_v29  ;;  %v3613_v7 = vand.u32 4294901760, %v3612_v48 }
 0x622   :  { %v3041_v40 = vsel %vm1897_vm12, %v3031_v3, 0 }
 0x623   :  { %v3112_v12 = vand.u32 4294901760, %v3041_v40 }
 0x625   :  { %v3113_v54 = vsub.f32 %v3041_v40, %v3112_v12  ;;  %4789 = vmatmul.mubr.f32.vlgmr.msra.gmra.mxu1 %v3112_v12 }
 0x626   :  { %4797 = vmatpush3.msra.mxu1 %v3077_v46  ;;  %4798 = vmatprep.mubr.msk.f32.mxu1 %vm4953_vm11, %v4948_v0 }
 0x627   :  { %v3114_v26 = vand.u32 4294901760, %v3113_v54  ;;  %4806 = vmatprep.subr.mxu1 %v4948_v0 }
 0x629   :  { %4799 = vmatmul.mubr.f32.vlgmr.msra.gmra.mxu1 %v3114_v26  ;;  %v3115_v6 = vsub.f32 %v3113_v54, %v3114_v26 }
 0x62a   :  { %4807 = vmatpush3.msra.mxu1 %v3077_v46  ;;  %4808 = vmatprep.mubr.msk.f32.mxu1 %vm4953_vm11, %v4948_v0 }
 0x62b   :  { %v3116_v50 = vand.u32 4294901760, %v3115_v6  ;;  %4816 = vmatprep.subr.mxu1 %v4948_v0 }
 0x62d   :  { %4784 = vmatmul.mubr.f32.vlgmr.msra.gmra.mxu0 %v3116_v50  ;;  %4809 = vmatmul.mubr.f32.vlgmr.msra.gmra.mxu1 %v3112_v12 }
 0x62e   :  { %4792 = vmatpush3.msra.mxu0 %v6126_v59  ;;  %4793 = vmatprep.mubr.msk.f32.mxu0 %vm4953_vm11, %v4948_v0 }
 0x62f   :  { %4801 = vmatprep.subr.mxu0 %v4948_v0  ;;  %4817 = vmatpush3.msra.mxu1 %v3613_v7 }
 0x630   :  { %4818 = vmatprep.mubr.msk.f32.mxu1 %vm4953_vm11, %v4948_v0  ;;  %4826 = vmatprep.subr.mxu1 %v4948_v0 }
 0x631   :  { %4794 = vmatmul.mubr.f32.vlgmr.msra.gmra.mxu0 %v3113_v54  ;;  %4819 = vmatmul.mubr.f32.vlgmr.msra.gmra.mxu1 %v3568_v57 }
 0x632   :  { %4802 = vmatpush3.msra.mxu0 %v3155_v13  ;;  %4803 = vmatprep.mubr.msk.f32.mxu0 %vm4953_vm11, %v4948_v0 }
 0x633   :  { %4811 = vmatprep.subr.mxu0 %v4948_v0  ;;  %4827 = vmatpush3.msra.mxu1 %v3533_v52 }
 0x634   :  { %4828 = vmatprep.mubr.msk.f32.mxu1 %vm4953_vm11, %v4948_v0  ;;  %4836 = vmatprep.subr.mxu1 %v4948_v0 }
 0x635   :  { %4804 = vmatmul.mubr.f32.vlgmr.msra.gmra.mxu0 %v3112_v12  ;;  %4829 = vmatmul.mubr.f32.vlgmr.msra.gmra.mxu1 %v3570_v56 }
 0x636   :  { %4812 = vmatpush3.msra.mxu0 %v3533_v52  ;;  %4813 = vmatprep.mubr.msk.f32.mxu0 %vm4953_vm11, %v4948_v0 }
 0x637   :  { %4821 = vmatprep.subr.mxu0 %v4948_v0  ;;  %4837 = vmatpush3.msra.mxu1 %v3533_v52 }
 0x638   :  { %4838 = vmatprep.mubr.msk.f32.mxu1 %vm4953_vm11, %v4948_v0 }
 0x639   :  { %4814 = vmatmul.mubr.f32.vlgmr.msra.gmra.mxu0 %v3572_v63  ;;  %4839 = vmatmul.mubr.f32.vlgmr.msra.gmra.mxu1 %v3568_v57 }
 0x63a   :  { %4822 = vmatpush3.msra.mxu0 %v3610_v2  ;;  %4823 = vmatprep.mubr.msk.f32.mxu0 %vm4953_vm11, %v4948_v0 }
 0x63b   :  { %4831 = vmatprep.subr.mxu0 %v4948_v0 }
 0x63d   :  { %4824 = vmatmul.mubr.f32.vlgmr.msra.gmra.mxu0 %v3569_v10 }
 0x63e   :  { %4832 = vmatpush3.msra.mxu0 %v3611_v36  ;;  %4833 = vmatprep.mubr.msk.f32.mxu0 %vm4953_vm11, %v4948_v0 }
 0x641   :  { %4834 = vmatmul.mubr.f32.vlgmr.msra.gmra.mxu0 %v3568_v57 }
 0x6e5   :  { %v3194_v8 = vpop.f32.mrf.mxu1 }
 0x6e7   :  { %v4790_v20 = vpop.f32.mrf.mxu1 }
 0x6e9   :  { %v3342_v41 = vpop.f32.mrf.mxu1 }
 0x6eb   :  { %v4800_v44 = vpop.f32.mrf.mxu1 }
 0x6ed   :  { %v3118_v58 = vpop.f32.mrf.mxu0  ;;  %v3488_v61 = vpop.f32.mrf.mxu1 }
 0x6ee   :  { %v3119_v11 = vadd.f32 %v4018_v60, %v3118_v58 }
 0x6ef   :  { %v4785_v62 = vpop.f32.mrf.mxu0  ;;  %v4810_v4 = vpop.f32.mrf.mxu1 }
 0x6f0   :  { %v3195_v31 = vadd.f32 %v3194_v8, %v3119_v11 }
 0x6f1   :  { %v3268_v14 = vpop.f32.mrf.mxu0  ;;  %v3650_v22 = vpop.f32.mrf.mxu1 }
 0x6f2   :  { %v3269_v53 = vadd.f32 %v3268_v14, %v3195_v31 }
 0x6f3   :  { %v4795_v23 = vpop.f32.mrf.mxu0  ;;  %v4820_v9 = vpop.f32.mrf.mxu1 }
 0x6f4   :  { %v3343_v28 = vadd.f32 %v3342_v41, %v3269_v53 }
 0x6f5   :  { %v3416_v0 = vpop.f32.mrf.mxu0  ;;  %v3798_v33 = vpop.f32.mrf.mxu1 }
 0x6f6   :  { %v3417_v38 = vadd.f32 %v3416_v0, %v3343_v28 }
 0x6f7   :  { %v4805_v34 = vpop.f32.mrf.mxu0  ;;  %v4830_v46 = vpop.f32.mrf.mxu1 }
 0x6f8   :  { %v3489_v17 = vadd.f32 %v3488_v61, %v3417_v38 }
 0x6f9   :  { %v3574_v59 = vpop.f32.mrf.mxu0  ;;  %v3944_v13 = vpop.f32.mrf.mxu1 }
 0x6fa   :  { %v3651_v30 = vadd.f32 %v3650_v22, %v3574_v59 }
 0x6fb   :  { %v4815_v16 = vpop.f32.mrf.mxu0  ;;  %v4840_v18 = vpop.f32.mrf.mxu1 }
 0x6fd   :  { %v3724_v43 = vpop.f32.mrf.mxu0 }
 0x6fe   :  { %v3725_v47 = vadd.f32 %v3724_v43, %v3651_v30 }
 0x6ff   :  { %v4825_v25 = vpop.f32.mrf.mxu0 }
 0x700   :  { %v3799_v49 = vadd.f32 %v3798_v33, %v3725_v47 }
 0x701   :  { %v3872_v45 = vpop.f32.mrf.mxu0 }
 0x702   :  { %v3873_v51 = vadd.f32 %v3872_v45, %v3799_v49 }
 0x703   :  { %v4835_v55 = vpop.f32.mrf.mxu0 }
 0x704   :  { %v3945_v19 = vadd.f32 %v3944_v13, %v3873_v51 }
 0x706   :  { %v3948_v37 = vadd.f32 %v3945_v19, %v3489_v17 }
 0x708   :  { %3949 = vst [vmem:[#allocation6] sm:$0xff] %v3948_v37 }
 0x709   :  { %4937 = shalt.err (!%p4934_p5)
}
 0x70a   :  { %3959 = dma.vmem_to_hbm [thread:$0]  %s3957_s2, 128, %s6195_s20, [#allocation7]  }
 0x70b   :  { %4946 = dma.done.wait [#allocation7], 128  }
 0x70c   :  { %4947 = vsyncadd [#allocation7], 4294967168 }
 0x70d   :  { %3963 = vsyncpa [#allocation7], 1 }

</bundles_post_ra>
